<compile_context>
chip_gen: v5e
topology: v5e:2x2
jax: 0.10.0
libtpu: 0.0.40
codegen_flags: <defaults>
</compile_context>

<pallas_src>
import functools

import numpy as np
import jax
import jax.numpy as jnp
from jax import lax
from jax.experimental import pallas as pl
from jax.experimental.pallas import tpu as pltpu


# ------------------------------ Pallas kernel ------------------------------ #

def _conv_body(ee_ref, eo_ref, oe_ref, oo_ref, eeh_ref, eoh_ref,
               w_ref, b_ref, p6_ref, act_ref):
    """3x3/s2 conv tile from space-to-depth phase planes.

    ee/eo/oe/oo: (tr, Wp, Cin) bf16 phase planes (even/odd padded rows x even/odd cols).
    eeh/eoh:     (1, Wp, Cin)  halo row below the even-row blocks (kh=2 taps).
    w_ref:       (9*Cin, Cout_p) bf16 folded weight (kh-major, then kw, then cin).
    b_ref:       (1, Cout_p) f32 bias.
    p6_ref:      (tr, Wo, Cout_p) f32 output.
    act_ref:     optional (tr, Wo, Cout_p) bf16 relu(output) for the fused p6->p7 handoff.
    """
    tr, wo, cout_p = p6_ref.shape
    cin = ee_ref.shape[-1]

    def tap(plane_ref, halo_ref, row_shift, col_shift):
        cols = slice(col_shift, col_shift + wo)
        if row_shift == 0:
            t = plane_ref[:, cols, :]
        elif tr > 1:
            # rows 1..tr-1 of the block, plus the one halo row below the block
            t = jnp.concatenate(
                [plane_ref[1:tr, cols, :], halo_ref[:, cols, :]], axis=0)
        else:
            t = halo_ref[:, cols, :]
        return t.reshape(tr * wo, cin)

    # (kh, kw) taps in kh-major order, matching the folded weight layout.
    plan = (
        (ee_ref, None, 0, 0), (eo_ref, None, 0, 0), (ee_ref, None, 0, 1),          # kh = 0
        (oe_ref, None, 0, 0), (oo_ref, None, 0, 0), (oe_ref, None, 0, 1),          # kh = 1
        (ee_ref, eeh_ref, 1, 0), (eo_ref, eoh_ref, 1, 0), (ee_ref, eeh_ref, 1, 1),  # kh = 2
    )

    acc = None
    for t_idx, (pref, href, rs, cs) in enumerate(plan):
        d = jnp.dot(tap(pref, href, rs, cs),
                    w_ref[t_idx * cin:(t_idx + 1) * cin, :],
                    preferred_element_type=jnp.float32)
        acc = d if acc is None else acc + d

    out = acc + b_ref[...]
    p6_ref[...] = out.reshape(tr, wo, cout_p).astype(p6_ref.dtype)
    if act_ref is not None:
        # relu + bf16 cast ride the VPU for free under a memory-bound kernel.
        act_ref[...] = jnp.maximum(out, 0.0).reshape(tr, wo, cout_p).astype(act_ref.dtype)


def _conv_kernel(ee, eo, oe, oo, eeh, eoh, w, b, p6_ref):
    _conv_body(ee, eo, oe, oo, eeh, eoh, w, b, p6_ref, None)


def _conv_kernel_with_act(ee, eo, oe, oo, eeh, eoh, w, b, p6_ref, act_ref):
    _conv_body(ee, eo, oe, oo, eeh, eoh, w, b, p6_ref, act_ref)


# -------------------------------- wrappers --------------------------------- #

def _round_up(x, m):
    return ((x + m - 1) // m) * m


def _cdiv(a, b):
    return -(-a // b)


def _vmem_limits():
    """Generation-aware (budget for tile sizing, scoped VMEM limit) in bytes."""
    cap = 128 << 20
    try:
        cap = int(pltpu.get_tpu_info().vmem_capacity_bytes)
    except Exception:
        pass
    budget = min(24 << 20, cap // 3)      # per-step working-set target (v7x: ~21 MiB)
    limit = min(cap // 2, 64 << 20)       # scoped limit: 64 MiB on 128-MiB chips, 32 MiB on v7x
    return budget, limit


def _choose_row_tile(n, ho, wo, w_pad, cin, cout_p, budget_bytes):
    """Largest output-row tile fitting the VMEM budget; >= 2 grid steps when possible."""
    # Resident folded weight + bias (counted with 2 pipeline buffers).
    fixed = 2 * (9 * cin * cout_p * 2 + cout_p * 4)

    def step_bytes(tr):
        inp = 2 * (tr * 2 * w_pad * cin * 2)          # 4 bf16 phase-plane blocks, double-buffered
        outp = 2 * (tr * wo * cout_p * (4 + 2))       # f32 p6 + bf16 act blocks, double-buffered
        live = tr * wo * (2 * cin * 2 + cout_p * 4)   # ~2 live taps + f32 accumulator value
        return fixed + inp + outp + live

    tr = max(1, min(ho, max(1, 2048 // max(wo, 1))))  # cap matmul M around ~2k rows / step
    while tr > 1 and step_bytes(tr) > budget_bytes:
        tr = (tr + 1) // 2
    # v7x has 2 TensorCores: make sure the parallel grid has >= 2 steps when possible.
    if n * _cdiv(ho, tr) < 2 and ho > 1:
        tr = _cdiv(ho, 2)
    return max(1, tr)


def conv3x3_s2(x_nhwc, w_oihw, b, *, emit_act=False):
    """3x3 conv, stride 2, padding 1 (== nn.Conv2d(cin, cout, 3, 2, 1)), NHWC.

    x_nhwc may carry zero-padded extra input channels (>= w_oihw.shape[1]); the weight is
    zero-padded to match.  Returns f32 (N, Ho, Wo, Cout); with emit_act also returns a
    bf16 relu(out) with channels padded to a multiple of 128 for fusing into the next conv.
    """
    n, h, w, cin_x = x_nhwc.shape
    cout, cin_w = int(w_oihw.shape[0]), int(w_oihw.shape[1])
    assert cin_w <= cin_x
    ho = (h - 1) // 2 + 1
    wo = (w - 1) // 2 + 1
    cout_p = _round_up(cout, 128)

    # Space-to-depth phase planes of the zero-padded bf16 input.  XLA fuses pad + slice,
    # so this is ~1x input HBM traffic (vs the 2.25x im2col round trip of the old version).
    xp = jnp.pad(x_nhwc.astype(jnp.bfloat16), ((0, 0), (1, 1), (1, 1), (0, 0)))
    ee = xp[:, 0::2, 0::2, :]   # even padded rows, even padded cols
    eo = xp[:, 0::2, 1::2, :]   # even rows, odd cols
    oe = xp[:, 1::2, 0::2, :]   # odd rows, even cols
    oo = xp[:, 1::2, 1::2, :]   # odd rows, odd cols

    # Folded weight (kh, kw, cin_x, cout_p) -> (9*cin_x, cout_p); zero-pad extra input
    # channels (their activations are zero anyway) and output channels (lane-dense stores).
    wmat = jnp.transpose(w_oihw, (2, 3, 1, 0))
    wmat = jnp.pad(wmat, ((0, 0), (0, 0), (0, cin_x - cin_w), (0, cout_p - cout)))
    wmat = wmat.reshape(9 * cin_x, cout_p).astype(jnp.bfloat16)
    bias = jnp.pad(b, (0, cout_p - cout)).reshape(1, cout_p).astype(jnp.float32)

    budget, vmem_limit = _vmem_limits()
    tr = _choose_row_tile(n, ho, wo, w + 2, cin_x, cout_p, budget)
    ntiles = _cdiv(ho, tr)

    # One halo row (the even-plane row just below each block) per tile, for the kh=2 taps.
    # The clamped tail index only feeds output rows that Pallas masks on store.
    halo_idx = np.minimum((np.arange(ntiles) + 1) * tr, ee.shape[1] - 1)
    eeh = ee[:, halo_idx]
    eoh = eo[:, halo_idx]

    def _tile_spec(arr, rows):
        return pl.BlockSpec((None, rows, arr.shape[2], arr.shape[3]),
                            lambda ni, ji: (ni, ji, 0, 0))

    in_specs = [
        _tile_spec(ee, tr), _tile_spec(eo, tr), _tile_spec(oe, tr), _tile_spec(oo, tr),
        _tile_spec(eeh, 1), _tile_spec(eoh, 1),
        pl.BlockSpec((9 * cin_x, cout_p), lambda ni, ji: (0, 0)),   # resident folded weight
        pl.BlockSpec((1, cout_p), lambda ni, ji: (0, 0)),           # bias row
    ]
    out_block = pl.BlockSpec((None, tr, wo, cout_p), lambda ni, ji: (ni, ji, 0, 0))
    p6_shape = jax.ShapeDtypeStruct((n, ho, wo, cout_p), jnp.float32)

    if emit_act:
        out_shape = (p6_shape, jax.ShapeDtypeStruct((n, ho, wo, cout_p), jnp.bfloat16))
        out_specs = (out_block, out_block)
        kernel = _conv_kernel_with_act
    else:
        out_shape = p6_shape
        out_specs = out_block
        kernel = _conv_kernel

    outs = pl.pallas_call(
        kernel,
        out_shape=out_shape,
        grid=(n, ntiles),
        in_specs=in_specs,
        out_specs=out_specs,
        compiler_params=pltpu.CompilerParams(
            dimension_semantics=("parallel", "parallel"),
            vmem_limit_bytes=vmem_limit),
    )(ee, eo, oe, oo, eeh, eoh, wmat, bias)

    if emit_act:
        p6_pad, act_pad = outs
        return p6_pad[..., :cout], act_pad
    return outs[..., :cout]


# ----------------------------- module forward ------------------------------ #

def last_level_p6p7_forward(x_nchw, params):
    """LastLevelP6P7.forward: {'p6': p6(x), 'p7': p7(relu(p6))} (NCHW in/out, f32)."""
    x = jnp.transpose(x_nchw, (0, 2, 3, 1))                    # NCHW -> NHWC
    w6, b6 = params['p6']
    w7, b7 = params['p7']
    # Fused handoff: p6 kernel also emits bf16 relu(p6) (channel-padded) for p7.
    p6, act6 = conv3x3_s2(x, w6, b6, emit_act=True)
    p7 = conv3x3_s2(act6, w7, b7)
    return {'p6': jnp.transpose(p6, (0, 3, 1, 2)),
            'p7': jnp.transpose(p7, (0, 3, 1, 2))}


# -------------------------- parameters (synthetic) -------------------------- #

def _c2_xavier_conv(key, cout, cin, ksize, random_bias=False):
    """c2_xavier_fill: kaiming_uniform_(a=1) => U(-sqrt(3/fan_in), +); bias=0."""
    kw_, kb_ = jax.random.split(key)
    fan_in = cin * ksize * ksize
    bound = (3.0 / fan_in) ** 0.5
    w = jax.random.uniform(kw_, (cout, cin, ksize, ksize), jnp.float32, -bound, bound)
    if random_bias:  # small random bias so the fused bias-add path is exercised
        b = 0.1 * jax.random.normal(kb_, (cout,), jnp.float32)
    else:
        b = jnp.zeros((cout,), jnp.float32)
    return w, b


# ---------------------------- pure-JAX reference ---------------------------- #

def _ref_conv_s2(x_nhwc, w_oihw, b):
    # bf16 inputs + f32 accumulation, mirroring the kernel's precision trade-off.
    w_hwio = jnp.transpose(w_oihw, (2, 3, 1, 0)).astype(jnp.bfloat16)
    out = lax.conv_general_dilated(
        x_nhwc.astype(jnp.bfloat16), w_hwio, (2, 2), padding=[(1, 1), (1, 1)],
        dimension_numbers=('NHWC', 'HWIO', 'NHWC'),
        preferred_element_type=jnp.float32)
    return out + b.reshape(1, 1, 1, -1)


def last_level_p6p7_ref(x_nchw, params):
    x = jnp.transpose(x_nchw, (0, 2, 3, 1))
    p6 = _ref_conv_s2(x, *params['p6'])
    p7 = _ref_conv_s2(jnp.maximum(p6, 0.0), *params['p7'])
    return {'p6': jnp.transpose(p6, (0, 3, 1, 2)),
            'p7': jnp.transpose(p7, (0, 3, 1, 2))}


# ----------------------------------- main ----------------------------------- #

if __name__ == "__main__":
    key = jax.random.PRNGKey(0)
    fwd = jax.jit(last_level_p6p7_forward)

    configs = [
        dict(n=2, cin=32, cout=64, h=16, w=16),   # even dims, one row tile per image, 2 grid steps
        dict(n=1, cin=16, cout=32, h=10, w=10),   # odd Ho/Wo, row-tiled (>=2 steps), tail + halo clamp
    ]
    for cfg in configs:
        key, kx, k6, k7 = jax.random.split(key, 4)
        x = jax.random.normal(kx, (cfg['n'], cfg['cin'], cfg['h'], cfg['w']), jnp.float32)
        params = {
            'p6': _c2_xavier_conv(k6, cfg['cout'], cfg['cin'], 3, random_bias=True),
            'p7': _c2_xavier_conv(k7, cfg['cout'], cfg['cout'], 3, random_bias=True),
        }

        outs = jax.block_until_ready(fwd(x, params))
        refs = last_level_p6p7_ref(x, params)

        ho6 = (cfg['h'] - 1) // 2 + 1
        wo6 = (cfg['w'] - 1) // 2 + 1
        ho7 = (ho6 - 1) // 2 + 1
        wo7 = (wo6 - 1) // 2 + 1
        assert outs['p6'].shape == (cfg['n'], cfg['cout'], ho6, wo6), outs['p6'].shape
        assert outs['p7'].shape == (cfg['n'], cfg['cout'], ho7, wo7), outs['p7'].shape
        for name in ('p6', 'p7'):
            assert outs[name].shape == refs[name].shape, (name, outs[name].shape)
            # bf16 inputs / f32 accumulation on both paths; tolerance covers accumulation
            # order and borderline bf16 rounding on the fused relu handoff.
            assert jnp.allclose(outs[name], refs[name], atol=5e-3, rtol=5e-3), (
                name, cfg, float(jnp.max(jnp.abs(outs[name] - refs[name]))))

    print("KERNEL_OK")
</pallas_src>

<mosaic_0001>
module attributes {stable_mosaic.version = 11 : i64} {
  func.func @_conv_kernel_with_act(%arg0: i32, %arg1: i32, %arg2: memref<1x8x9x32xbf16, #tpu.memory_space<vmem>>, %arg3: memref<1x8x9x32xbf16, #tpu.memory_space<vmem>>, %arg4: memref<1x8x9x32xbf16, #tpu.memory_space<vmem>>, %arg5: memref<1x8x9x32xbf16, #tpu.memory_space<vmem>>, %arg6: memref<1x1x9x32xbf16, #tpu.memory_space<vmem>>, %arg7: memref<1x1x9x32xbf16, #tpu.memory_space<vmem>>, %arg8: memref<288x128xbf16, #tpu.memory_space<vmem>>, %arg9: memref<1x128xf32, #tpu.memory_space<vmem>>, %arg10: memref<1x8x8x128xf32, #tpu.memory_space<vmem>>, %arg11: memref<1x8x8x128xbf16, #tpu.memory_space<vmem>>) attributes {dimension_semantics = [#tpu.dimension_semantics<parallel>, #tpu.dimension_semantics<parallel>], iteration_bounds = array<i64: 2, 1>, scalar_prefetch = 0 : i64, scratch_operands = 0 : i64, tpu.core_type = #tpu.core_type<tc>, window_params = [{transform_indices = @transform_0, window_bounds = array<i64: 1, 8, 9, 32>}, {transform_indices = @transform_1, window_bounds = array<i64: 1, 8, 9, 32>}, {transform_indices = @transform_2, window_bounds = array<i64: 1, 8, 9, 32>}, {transform_indices = @transform_3, window_bounds = array<i64: 1, 8, 9, 32>}, {transform_indices = @transform_4, window_bounds = array<i64: 1, 1, 9, 32>}, {transform_indices = @transform_5, window_bounds = array<i64: 1, 1, 9, 32>}, {pipeline_mode = #tpu.pipeline_mode<synchronous>, transform_indices = @transform_6, window_bounds = array<i64: 288, 128>}, {pipeline_mode = #tpu.pipeline_mode<synchronous>, transform_indices = @transform_7, window_bounds = array<i64: 1, 128>}, {transform_indices = @transform_8, window_bounds = array<i64: 1, 8, 8, 128>}, {transform_indices = @transform_9, window_bounds = array<i64: 1, 8, 8, 128>}]} {
    %c0 = arith.constant 0 : index
    %c0_0 = arith.constant 0 : index
    %c0_1 = arith.constant 0 : index
    %c0_2 = arith.constant 0 : index
    %0 = vector.load %arg2[%c0, %c0_0, %c0_1, %c0_2] : memref<1x8x9x32xbf16, #tpu.memory_space<vmem>>, vector<1x8x8x32xbf16>
    %1 = vector.shape_cast %0 : vector<1x8x8x32xbf16> to vector<8x8x32xbf16>
    %2 = vector.shape_cast %1 : vector<8x8x32xbf16> to vector<64x32xbf16>
    %c0_3 = arith.constant 0 : index
    %c0_4 = arith.constant 0 : index
    %3 = vector.load %arg8[%c0_3, %c0_4] : memref<288x128xbf16, #tpu.memory_space<vmem>>, vector<32x128xbf16>
    %cst = arith.constant dense<0.000000e+00> : vector<64x128xf32>
    %4 = tpu.matmul %2, %3, %cst {dimension_numbers = #tpu.dot_dimension_numbers<[1], [0], [0], [1], [0, 0, 1, 1], [], []>} : vector<64x32xbf16>, vector<32x128xbf16>, vector<64x128xf32> -> vector<64x128xf32>
    %c0_5 = arith.constant 0 : index
    %c0_6 = arith.constant 0 : index
    %c0_7 = arith.constant 0 : index
    %c0_8 = arith.constant 0 : index
    %5 = vector.load %arg3[%c0_5, %c0_6, %c0_7, %c0_8] : memref<1x8x9x32xbf16, #tpu.memory_space<vmem>>, vector<1x8x8x32xbf16>
    %6 = vector.shape_cast %5 : vector<1x8x8x32xbf16> to vector<8x8x32xbf16>
    %7 = vector.shape_cast %6 : vector<8x8x32xbf16> to vector<64x32xbf16>
    %c32 = arith.constant 32 : index
    %c0_9 = arith.constant 0 : index
    %8 = vector.load %arg8[%c32, %c0_9] : memref<288x128xbf16, #tpu.memory_space<vmem>>, vector<32x128xbf16>
    %cst_10 = arith.constant dense<0.000000e+00> : vector<64x128xf32>
    %9 = tpu.matmul %7, %8, %cst_10 {dimension_numbers = #tpu.dot_dimension_numbers<[1], [0], [0], [1], [0, 0, 1, 1], [], []>} : vector<64x32xbf16>, vector<32x128xbf16>, vector<64x128xf32> -> vector<64x128xf32>
    %10 = arith.addf %4, %9 : vector<64x128xf32>
    %c0_11 = arith.constant 0 : index
    %c0_12 = arith.constant 0 : index
    %c1 = arith.constant 1 : index
    %c0_13 = arith.constant 0 : index
    %11 = vector.load %arg2[%c0_11, %c0_12, %c1, %c0_13] : memref<1x8x9x32xbf16, #tpu.memory_space<vmem>>, vector<1x8x8x32xbf16>
    %12 = vector.shape_cast %11 : vector<1x8x8x32xbf16> to vector<8x8x32xbf16>
    %13 = vector.shape_cast %12 : vector<8x8x32xbf16> to vector<64x32xbf16>
    %c64 = arith.constant 64 : index
    %c0_14 = arith.constant 0 : index
    %14 = vector.load %arg8[%c64, %c0_14] : memref<288x128xbf16, #tpu.memory_space<vmem>>, vector<32x128xbf16>
    %cst_15 = arith.constant dense<0.000000e+00> : vector<64x128xf32>
    %15 = tpu.matmul %13, %14, %cst_15 {dimension_numbers = #tpu.dot_dimension_numbers<[1], [0], [0], [1], [0, 0, 1, 1], [], []>} : vector<64x32xbf16>, vector<32x128xbf16>, vector<64x128xf32> -> vector<64x128xf32>
    %16 = arith.addf %10, %15 : vector<64x128xf32>
    %c0_16 = arith.constant 0 : index
    %c0_17 = arith.constant 0 : index
    %c0_18 = arith.constant 0 : index
    %c0_19 = arith.constant 0 : index
    %17 = vector.load %arg4[%c0_16, %c0_17, %c0_18, %c0_19] : memref<1x8x9x32xbf16, #tpu.memory_space<vmem>>, vector<1x8x8x32xbf16>
    %18 = vector.shape_cast %17 : vector<1x8x8x32xbf16> to vector<8x8x32xbf16>
    %19 = vector.shape_cast %18 : vector<8x8x32xbf16> to vector<64x32xbf16>
    %c96 = arith.constant 96 : index
    %c0_20 = arith.constant 0 : index
    %20 = vector.load %arg8[%c96, %c0_20] : memref<288x128xbf16, #tpu.memory_space<vmem>>, vector<32x128xbf16>
    %cst_21 = arith.constant dense<0.000000e+00> : vector<64x128xf32>
    %21 = tpu.matmul %19, %20, %cst_21 {dimension_numbers = #tpu.dot_dimension_numbers<[1], [0], [0], [1], [0, 0, 1, 1], [], []>} : vector<64x32xbf16>, vector<32x128xbf16>, vector<64x128xf32> -> vector<64x128xf32>
    %22 = arith.addf %16, %21 : vector<64x128xf32>
    %c0_22 = arith.constant 0 : index
    %c0_23 = arith.constant 0 : index
    %c0_24 = arith.constant 0 : index
    %c0_25 = arith.constant 0 : index
    %23 = vector.load %arg5[%c0_22, %c0_23, %c0_24, %c0_25] : memref<1x8x9x32xbf16, #tpu.memory_space<vmem>>, vector<1x8x8x32xbf16>
    %24 = vector.shape_cast %23 : vector<1x8x8x32xbf16> to vector<8x8x32xbf16>
    %25 = vector.shape_cast %24 : vector<8x8x32xbf16> to vector<64x32xbf16>
    %c128 = arith.constant 128 : index
    %c0_26 = arith.constant 0 : index
    %26 = vector.load %arg8[%c128, %c0_26] : memref<288x128xbf16, #tpu.memory_space<vmem>>, vector<32x128xbf16>
    %cst_27 = arith.constant dense<0.000000e+00> : vector<64x128xf32>
    %27 = tpu.matmul %25, %26, %cst_27 {dimension_numbers = #tpu.dot_dimension_numbers<[1], [0], [0], [1], [0, 0, 1, 1], [], []>} : vector<64x32xbf16>, vector<32x128xbf16>, vector<64x128xf32> -> vector<64x128xf32>
    %28 = arith.addf %22, %27 : vector<64x128xf32>
    %c0_28 = arith.constant 0 : index
    %c0_29 = arith.constant 0 : index
    %c1_30 = arith.constant 1 : index
    %c0_31 = arith.constant 0 : index
    %29 = vector.load %arg4[%c0_28, %c0_29, %c1_30, %c0_31] : memref<1x8x9x32xbf16, #tpu.memory_space<vmem>>, vector<1x8x8x32xbf16>
    %30 = vector.shape_cast %29 : vector<1x8x8x32xbf16> to vector<8x8x32xbf16>
    %31 = vector.shape_cast %30 : vector<8x8x32xbf16> to vector<64x32xbf16>
    %c160 = arith.constant 160 : index
    %c0_32 = arith.constant 0 : index
    %32 = vector.load %arg8[%c160, %c0_32] : memref<288x128xbf16, #tpu.memory_space<vmem>>, vector<32x128xbf16>
    %cst_33 = arith.constant dense<0.000000e+00> : vector<64x128xf32>
    %33 = tpu.matmul %31, %32, %cst_33 {dimension_numbers = #tpu.dot_dimension_numbers<[1], [0], [0], [1], [0, 0, 1, 1], [], []>} : vector<64x32xbf16>, vector<32x128xbf16>, vector<64x128xf32> -> vector<64x128xf32>
    %34 = arith.addf %28, %33 : vector<64x128xf32>
    %c0_34 = arith.constant 0 : index
    %c1_35 = arith.constant 1 : index
    %c0_36 = arith.constant 0 : index
    %c0_37 = arith.constant 0 : index
    %35 = vector.load %arg2[%c0_34, %c1_35, %c0_36, %c0_37] : memref<1x8x9x32xbf16, #tpu.memory_space<vmem>>, vector<1x7x8x32xbf16>
    %36 = vector.shape_cast %35 : vector<1x7x8x32xbf16> to vector<7x8x32xbf16>
    %c0_38 = arith.constant 0 : index
    %c0_39 = arith.constant 0 : index
    %c0_40 = arith.constant 0 : index
    %c0_41 = arith.constant 0 : index
    %37 = vector.load %arg6[%c0_38, %c0_39, %c0_40, %c0_41] : memref<1x1x9x32xbf16, #tpu.memory_space<vmem>>, vector<1x1x8x32xbf16>
    %38 = vector.shape_cast %37 : vector<1x1x8x32xbf16> to vector<1x8x32xbf16>
    %39 = tpu.concatenate %36, %38 in 0 : vector<7x8x32xbf16>, vector<1x8x32xbf16> -> vector<8x8x32xbf16>
    %40 = vector.shape_cast %39 : vector<8x8x32xbf16> to vector<64x32xbf16>
    %c192 = arith.constant 192 : index
    %c0_42 = arith.constant 0 : index
    %41 = vector.load %arg8[%c192, %c0_42] : memref<288x128xbf16, #tpu.memory_space<vmem>>, vector<32x128xbf16>
    %cst_43 = arith.constant dense<0.000000e+00> : vector<64x128xf32>
    %42 = tpu.matmul %40, %41, %cst_43 {dimension_numbers = #tpu.dot_dimension_numbers<[1], [0], [0], [1], [0, 0, 1, 1], [], []>} : vector<64x32xbf16>, vector<32x128xbf16>, vector<64x128xf32> -> vector<64x128xf32>
    %43 = arith.addf %34, %42 : vector<64x128xf32>
    %c0_44 = arith.constant 0 : index
    %c1_45 = arith.constant 1 : index
    %c0_46 = arith.constant 0 : index
    %c0_47 = arith.constant 0 : index
    %44 = vector.load %arg3[%c0_44, %c1_45, %c0_46, %c0_47] : memref<1x8x9x32xbf16, #tpu.memory_space<vmem>>, vector<1x7x8x32xbf16>
    %45 = vector.shape_cast %44 : vector<1x7x8x32xbf16> to vector<7x8x32xbf16>
    %c0_48 = arith.constant 0 : index
    %c0_49 = arith.constant 0 : index
    %c0_50 = arith.constant 0 : index
    %c0_51 = arith.constant 0 : index
    %46 = vector.load %arg7[%c0_48, %c0_49, %c0_50, %c0_51] : memref<1x1x9x32xbf16, #tpu.memory_space<vmem>>, vector<1x1x8x32xbf16>
    %47 = vector.shape_cast %46 : vector<1x1x8x32xbf16> to vector<1x8x32xbf16>
    %48 = tpu.concatenate %45, %47 in 0 : vector<7x8x32xbf16>, vector<1x8x32xbf16> -> vector<8x8x32xbf16>
    %49 = vector.shape_cast %48 : vector<8x8x32xbf16> to vector<64x32xbf16>
    %c224 = arith.constant 224 : index
    %c0_52 = arith.constant 0 : index
    %50 = vector.load %arg8[%c224, %c0_52] : memref<288x128xbf16, #tpu.memory_space<vmem>>, vector<32x128xbf16>
    %cst_53 = arith.constant dense<0.000000e+00> : vector<64x128xf32>
    %51 = tpu.matmul %49, %50, %cst_53 {dimension_numbers = #tpu.dot_dimension_numbers<[1], [0], [0], [1], [0, 0, 1, 1], [], []>} : vector<64x32xbf16>, vector<32x128xbf16>, vector<64x128xf32> -> vector<64x128xf32>
    %52 = arith.addf %43, %51 : vector<64x128xf32>
    %c0_54 = arith.constant 0 : index
    %c1_55 = arith.constant 1 : index
    %c1_56 = arith.constant 1 : index
    %c0_57 = arith.constant 0 : index
    %53 = vector.load %arg2[%c0_54, %c1_55, %c1_56, %c0_57] : memref<1x8x9x32xbf16, #tpu.memory_space<vmem>>, vector<1x7x8x32xbf16>
    %54 = vector.shape_cast %53 : vector<1x7x8x32xbf16> to vector<7x8x32xbf16>
    %c0_58 = arith.constant 0 : index
    %c0_59 = arith.constant 0 : index
    %c1_60 = arith.constant 1 : index
    %c0_61 = arith.constant 0 : index
    %55 = vector.load %arg6[%c0_58, %c0_59, %c1_60, %c0_61] : memref<1x1x9x32xbf16, #tpu.memory_space<vmem>>, vector<1x1x8x32xbf16>
    %56 = vector.shape_cast %55 : vector<1x1x8x32xbf16> to vector<1x8x32xbf16>
    %57 = tpu.concatenate %54, %56 in 0 : vector<7x8x32xbf16>, vector<1x8x32xbf16> -> vector<8x8x32xbf16>
    %58 = vector.shape_cast %57 : vector<8x8x32xbf16> to vector<64x32xbf16>
    %c256 = arith.constant 256 : index
    %c0_62 = arith.constant 0 : index
    %59 = vector.load %arg8[%c256, %c0_62] : memref<288x128xbf16, #tpu.memory_space<vmem>>, vector<32x128xbf16>
    %cst_63 = arith.constant dense<0.000000e+00> : vector<64x128xf32>
    %60 = tpu.matmul %58, %59, %cst_63 {dimension_numbers = #tpu.dot_dimension_numbers<[1], [0], [0], [1], [0, 0, 1, 1], [], []>} : vector<64x32xbf16>, vector<32x128xbf16>, vector<64x128xf32> -> vector<64x128xf32>
    %61 = arith.addf %52, %60 : vector<64x128xf32>
    %c0_64 = arith.constant 0 : index
    %c0_65 = arith.constant 0 : index
    %62 = vector.load %arg9[%c0_64, %c0_65] : memref<1x128xf32, #tpu.memory_space<vmem>>, vector<1x128xf32>
    %63 = vector.broadcast %62 : vector<1x128xf32> to vector<64x128xf32>
    %64 = arith.addf %61, %63 : vector<64x128xf32>
    %65 = vector.shape_cast %64 : vector<64x128xf32> to vector<8x8x128xf32>
    %c0_66 = arith.constant 0 : index
    %c0_67 = arith.constant 0 : index
    %c0_68 = arith.constant 0 : index
    %c0_69 = arith.constant 0 : index
    %66 = vector.load %arg10[%c0_66, %c0_67, %c0_68, %c0_69] : memref<1x8x8x128xf32, #tpu.memory_space<vmem>>, vector<1x8x8x128xf32>
    %67 = vector.shape_cast %66 : vector<1x8x8x128xf32> to vector<8x8x128xf32>
    %68 = vector.shape_cast %65 : vector<8x8x128xf32> to vector<1x8x8x128xf32>
    tpu.vector_store %arg10[%c0_66, %c0_67, %c0_68, %c0_69], %68 {strides = array<i32>} : memref<1x8x8x128xf32, #tpu.memory_space<vmem>>, vector<1x8x8x128xf32>,
    %cst_70 = arith.constant 0.000000e+00 : f32
    %69 = vector.broadcast %cst_70 : f32 to vector<64x128xf32>
    %70 = arith.maximumf %64, %69 : vector<64x128xf32>
    %71 = vector.shape_cast %70 : vector<64x128xf32> to vector<8x8x128xf32>
    %72 = arith.truncf %71 : vector<8x8x128xf32> to vector<8x8x128xbf16>
    %c0_71 = arith.constant 0 : index
    %c0_72 = arith.constant 0 : index
    %c0_73 = arith.constant 0 : index
    %c0_74 = arith.constant 0 : index
    %73 = vector.load %arg11[%c0_71, %c0_72, %c0_73, %c0_74] : memref<1x8x8x128xbf16, #tpu.memory_space<vmem>>, vector<1x8x8x128xbf16>
    %74 = vector.shape_cast %73 : vector<1x8x8x128xbf16> to vector<8x8x128xbf16>
    %75 = vector.shape_cast %72 : vector<8x8x128xbf16> to vector<1x8x8x128xbf16>
    tpu.vector_store %arg11[%c0_71, %c0_72, %c0_73, %c0_74], %75 {strides = array<i32>} : memref<1x8x8x128xbf16, #tpu.memory_space<vmem>>, vector<1x8x8x128xbf16>,
    return
  }
  func.func @transform_0(%arg0: i32, %arg1: i32) -> (i32, i32, i32, i32) {
    %c0_i32 = arith.constant 0 : i32
    %c0_i32_0 = arith.constant 0 : i32
    %c0_i32_1 = arith.constant 0 : i32
    return %arg0, %arg1, %c0_i32, %c0_i32_0 : i32, i32, i32, i32
  }
  func.func @transform_1(%arg0: i32, %arg1: i32) -> (i32, i32, i32, i32) {
    %c0_i32 = arith.constant 0 : i32
    %c0_i32_0 = arith.constant 0 : i32
    %c0_i32_1 = arith.constant 0 : i32
    return %arg0, %arg1, %c0_i32, %c0_i32_0 : i32, i32, i32, i32
  }
  func.func @transform_2(%arg0: i32, %arg1: i32) -> (i32, i32, i32, i32) {
    %c0_i32 = arith.constant 0 : i32
    %c0_i32_0 = arith.constant 0 : i32
    %c0_i32_1 = arith.constant 0 : i32
    return %arg0, %arg1, %c0_i32, %c0_i32_0 : i32, i32, i32, i32
  }
  func.func @transform_3(%arg0: i32, %arg1: i32) -> (i32, i32, i32, i32) {
    %c0_i32 = arith.constant 0 : i32
    %c0_i32_0 = arith.constant 0 : i32
    %c0_i32_1 = arith.constant 0 : i32
    return %arg0, %arg1, %c0_i32, %c0_i32_0 : i32, i32, i32, i32
  }
  func.func @transform_4(%arg0: i32, %arg1: i32) -> (i32, i32, i32, i32) {
    %c0_i32 = arith.constant 0 : i32
    %c0_i32_0 = arith.constant 0 : i32
    %c0_i32_1 = arith.constant 0 : i32
    return %arg0, %arg1, %c0_i32, %c0_i32_0 : i32, i32, i32, i32
  }
  func.func @transform_5(%arg0: i32, %arg1: i32) -> (i32, i32, i32, i32) {
    %c0_i32 = arith.constant 0 : i32
    %c0_i32_0 = arith.constant 0 : i32
    %c0_i32_1 = arith.constant 0 : i32
    return %arg0, %arg1, %c0_i32, %c0_i32_0 : i32, i32, i32, i32
  }
  func.func @transform_6(%arg0: i32, %arg1: i32) -> (i32, i32) {
    %c0_i32 = arith.constant 0 : i32
    %c0_i32_0 = arith.constant 0 : i32
    %c0_i32_1 = arith.constant 0 : i32
    return %c0_i32, %c0_i32_0 : i32, i32
  }
  func.func @transform_7(%arg0: i32, %arg1: i32) -> (i32, i32) {
    %c0_i32 = arith.constant 0 : i32
    %c0_i32_0 = arith.constant 0 : i32
    %c0_i32_1 = arith.constant 0 : i32
    return %c0_i32, %c0_i32_0 : i32, i32
  }
  func.func @transform_8(%arg0: i32, %arg1: i32) -> (i32, i32, i32, i32) {
    %c0_i32 = arith.constant 0 : i32
    %c0_i32_0 = arith.constant 0 : i32
    %c0_i32_1 = arith.constant 0 : i32
    return %arg0, %arg1, %c0_i32, %c0_i32_0 : i32, i32, i32, i32
  }
  func.func @transform_9(%arg0: i32, %arg1: i32) -> (i32, i32, i32, i32) {
    %c0_i32 = arith.constant 0 : i32
    %c0_i32_0 = arith.constant 0 : i32
    %c0_i32_1 = arith.constant 0 : i32
    return %arg0, %arg1, %c0_i32, %c0_i32_0 : i32, i32, i32, i32
  }
}

module attributes {stable_mosaic.version = 11 : i64} {
  func.func @_conv_kernel(%arg0: i32, %arg1: i32, %arg2: memref<1x4x5x128xbf16, #tpu.memory_space<vmem>>, %arg3: memref<1x4x5x128xbf16, #tpu.memory_space<vmem>>, %arg4: memref<1x4x5x128xbf16, #tpu.memory_space<vmem>>, %arg5: memref<1x4x5x128xbf16, #tpu.memory_space<vmem>>, %arg6: memref<1x1x5x128xbf16, #tpu.memory_space<vmem>>, %arg7: memref<1x1x5x128xbf16, #tpu.memory_space<vmem>>, %arg8: memref<1152x128xbf16, #tpu.memory_space<vmem>>, %arg9: memref<1x128xf32, #tpu.memory_space<vmem>>, %arg10: memref<1x4x4x128xf32, #tpu.memory_space<vmem>>) attributes {dimension_semantics = [#tpu.dimension_semantics<parallel>, #tpu.dimension_semantics<parallel>], iteration_bounds = array<i64: 2, 1>, scalar_prefetch = 0 : i64, scratch_operands = 0 : i64, tpu.core_type = #tpu.core_type<tc>, window_params = [{transform_indices = @transform_0, window_bounds = array<i64: 1, 4, 5, 128>}, {transform_indices = @transform_1, window_bounds = array<i64: 1, 4, 5, 128>}, {transform_indices = @transform_2, window_bounds = array<i64: 1, 4, 5, 128>}, {transform_indices = @transform_3, window_bounds = array<i64: 1, 4, 5, 128>}, {transform_indices = @transform_4, window_bounds = array<i64: 1, 1, 5, 128>}, {transform_indices = @transform_5, window_bounds = array<i64: 1, 1, 5, 128>}, {pipeline_mode = #tpu.pipeline_mode<synchronous>, transform_indices = @transform_6, window_bounds = array<i64: 1152, 128>}, {pipeline_mode = #tpu.pipeline_mode<synchronous>, transform_indices = @transform_7, window_bounds = array<i64: 1, 128>}, {transform_indices = @transform_8, window_bounds = array<i64: 1, 4, 4, 128>}]} {
    %c0 = arith.constant 0 : index
    %c0_0 = arith.constant 0 : index
    %c0_1 = arith.constant 0 : index
    %c0_2 = arith.constant 0 : index
    %0 = vector.load %arg2[%c0, %c0_0, %c0_1, %c0_2] : memref<1x4x5x128xbf16, #tpu.memory_space<vmem>>, vector<1x4x4x128xbf16>
    %1 = vector.shape_cast %0 : vector<1x4x4x128xbf16> to vector<4x4x128xbf16>
    %2 = vector.shape_cast %1 : vector<4x4x128xbf16> to vector<16x128xbf16>
    %c0_3 = arith.constant 0 : index
    %c0_4 = arith.constant 0 : index
    %3 = vector.load %arg8[%c0_3, %c0_4] : memref<1152x128xbf16, #tpu.memory_space<vmem>>, vector<128x128xbf16>
    %cst = arith.constant dense<0.000000e+00> : vector<16x128xf32>
    %4 = tpu.matmul %2, %3, %cst {dimension_numbers = #tpu.dot_dimension_numbers<[1], [0], [0], [1], [0, 0, 1, 1], [], []>} : vector<16x128xbf16>, vector<128x128xbf16>, vector<16x128xf32> -> vector<16x128xf32>
    %c0_5 = arith.constant 0 : index
    %c0_6 = arith.constant 0 : index
    %c0_7 = arith.constant 0 : index
    %c0_8 = arith.constant 0 : index
    %5 = vector.load %arg3[%c0_5, %c0_6, %c0_7, %c0_8] : memref<1x4x5x128xbf16, #tpu.memory_space<vmem>>, vector<1x4x4x128xbf16>
    %6 = vector.shape_cast %5 : vector<1x4x4x128xbf16> to vector<4x4x128xbf16>
    %7 = vector.shape_cast %6 : vector<4x4x128xbf16> to vector<16x128xbf16>
    %c128 = arith.constant 128 : index
    %c0_9 = arith.constant 0 : index
    %8 = vector.load %arg8[%c128, %c0_9] : memref<1152x128xbf16, #tpu.memory_space<vmem>>, vector<128x128xbf16>
    %cst_10 = arith.constant dense<0.000000e+00> : vector<16x128xf32>
    %9 = tpu.matmul %7, %8, %cst_10 {dimension_numbers = #tpu.dot_dimension_numbers<[1], [0], [0], [1], [0, 0, 1, 1], [], []>} : vector<16x128xbf16>, vector<128x128xbf16>, vector<16x128xf32> -> vector<16x128xf32>
    %10 = arith.addf %4, %9 : vector<16x128xf32>
    %c0_11 = arith.constant 0 : index
    %c0_12 = arith.constant 0 : index
    %c1 = arith.constant 1 : index
    %c0_13 = arith.constant 0 : index
    %11 = vector.load %arg2[%c0_11, %c0_12, %c1, %c0_13] : memref<1x4x5x128xbf16, #tpu.memory_space<vmem>>, vector<1x4x4x128xbf16>
    %12 = vector.shape_cast %11 : vector<1x4x4x128xbf16> to vector<4x4x128xbf16>
    %13 = vector.shape_cast %12 : vector<4x4x128xbf16> to vector<16x128xbf16>
    %c256 = arith.constant 256 : index
    %c0_14 = arith.constant 0 : index
    %14 = vector.load %arg8[%c256, %c0_14] : memref<1152x128xbf16, #tpu.memory_space<vmem>>, vector<128x128xbf16>
    %cst_15 = arith.constant dense<0.000000e+00> : vector<16x128xf32>
    %15 = tpu.matmul %13, %14, %cst_15 {dimension_numbers = #tpu.dot_dimension_numbers<[1], [0], [0], [1], [0, 0, 1, 1], [], []>} : vector<16x128xbf16>, vector<128x128xbf16>, vector<16x128xf32> -> vector<16x128xf32>
    %16 = arith.addf %10, %15 : vector<16x128xf32>
    %c0_16 = arith.constant 0 : index
    %c0_17 = arith.constant 0 : index
    %c0_18 = arith.constant 0 : index
    %c0_19 = arith.constant 0 : index
    %17 = vector.load %arg4[%c0_16, %c0_17, %c0_18, %c0_19] : memref<1x4x5x128xbf16, #tpu.memory_space<vmem>>, vector<1x4x4x128xbf16>
    %18 = vector.shape_cast %17 : vector<1x4x4x128xbf16> to vector<4x4x128xbf16>
    %19 = vector.shape_cast %18 : vector<4x4x128xbf16> to vector<16x128xbf16>
    %c384 = arith.constant 384 : index
    %c0_20 = arith.constant 0 : index
    %20 = vector.load %arg8[%c384, %c0_20] : memref<1152x128xbf16, #tpu.memory_space<vmem>>, vector<128x128xbf16>
    %cst_21 = arith.constant dense<0.000000e+00> : vector<16x128xf32>
    %21 = tpu.matmul %19, %20, %cst_21 {dimension_numbers = #tpu.dot_dimension_numbers<[1], [0], [0], [1], [0, 0, 1, 1], [], []>} : vector<16x128xbf16>, vector<128x128xbf16>, vector<16x128xf32> -> vector<16x128xf32>
    %22 = arith.addf %16, %21 : vector<16x128xf32>
    %c0_22 = arith.constant 0 : index
    %c0_23 = arith.constant 0 : index
    %c0_24 = arith.constant 0 : index
    %c0_25 = arith.constant 0 : index
    %23 = vector.load %arg5[%c0_22, %c0_23, %c0_24, %c0_25] : memref<1x4x5x128xbf16, #tpu.memory_space<vmem>>, vector<1x4x4x128xbf16>
    %24 = vector.shape_cast %23 : vector<1x4x4x128xbf16> to vector<4x4x128xbf16>
    %25 = vector.shape_cast %24 : vector<4x4x128xbf16> to vector<16x128xbf16>
    %c512 = arith.constant 512 : index
    %c0_26 = arith.constant 0 : index
    %26 = vector.load %arg8[%c512, %c0_26] : memref<1152x128xbf16, #tpu.memory_space<vmem>>, vector<128x128xbf16>
    %cst_27 = arith.constant dense<0.000000e+00> : vector<16x128xf32>
    %27 = tpu.matmul %25, %26, %cst_27 {dimension_numbers = #tpu.dot_dimension_numbers<[1], [0], [0], [1], [0, 0, 1, 1], [], []>} : vector<16x128xbf16>, vector<128x128xbf16>, vector<16x128xf32> -> vector<16x128xf32>
    %28 = arith.addf %22, %27 : vector<16x128xf32>
    %c0_28 = arith.constant 0 : index
    %c0_29 = arith.constant 0 : index
    %c1_30 = arith.constant 1 : index
    %c0_31 = arith.constant 0 : index
    %29 = vector.load %arg4[%c0_28, %c0_29, %c1_30, %c0_31] : memref<1x4x5x128xbf16, #tpu.memory_space<vmem>>, vector<1x4x4x128xbf16>
    %30 = vector.shape_cast %29 : vector<1x4x4x128xbf16> to vector<4x4x128xbf16>
    %31 = vector.shape_cast %30 : vector<4x4x128xbf16> to vector<16x128xbf16>
    %c640 = arith.constant 640 : index
    %c0_32 = arith.constant 0 : index
    %32 = vector.load %arg8[%c640, %c0_32] : memref<1152x128xbf16, #tpu.memory_space<vmem>>, vector<128x128xbf16>
    %cst_33 = arith.constant dense<0.000000e+00> : vector<16x128xf32>
    %33 = tpu.matmul %31, %32, %cst_33 {dimension_numbers = #tpu.dot_dimension_numbers<[1], [0], [0], [1], [0, 0, 1, 1], [], []>} : vector<16x128xbf16>, vector<128x128xbf16>, vector<16x128xf32> -> vector<16x128xf32>
    %34 = arith.addf %28, %33 : vector<16x128xf32>
    %c0_34 = arith.constant 0 : index
    %c1_35 = arith.constant 1 : index
    %c0_36 = arith.constant 0 : index
    %c0_37 = arith.constant 0 : index
    %35 = vector.load %arg2[%c0_34, %c1_35, %c0_36, %c0_37] : memref<1x4x5x128xbf16, #tpu.memory_space<vmem>>, vector<1x3x4x128xbf16>
    %36 = vector.shape_cast %35 : vector<1x3x4x128xbf16> to vector<3x4x128xbf16>
    %c0_38 = arith.constant 0 : index
    %c0_39 = arith.constant 0 : index
    %c0_40 = arith.constant 0 : index
    %c0_41 = arith.constant 0 : index
    %37 = vector.load %arg6[%c0_38, %c0_39, %c0_40, %c0_41] : memref<1x1x5x128xbf16, #tpu.memory_space<vmem>>, vector<1x1x4x128xbf16>
    %38 = vector.shape_cast %37 : vector<1x1x4x128xbf16> to vector<1x4x128xbf16>
    %39 = tpu.concatenate %36, %38 in 0 : vector<3x4x128xbf16>, vector<1x4x128xbf16> -> vector<4x4x128xbf16>
    %40 = vector.shape_cast %39 : vector<4x4x128xbf16> to vector<16x128xbf16>
    %c768 = arith.constant 768 : index
    %c0_42 = arith.constant 0 : index
    %41 = vector.load %arg8[%c768, %c0_42] : memref<1152x128xbf16, #tpu.memory_space<vmem>>, vector<128x128xbf16>
    %cst_43 = arith.constant dense<0.000000e+00> : vector<16x128xf32>
    %42 = tpu.matmul %40, %41, %cst_43 {dimension_numbers = #tpu.dot_dimension_numbers<[1], [0], [0], [1], [0, 0, 1, 1], [], []>} : vector<16x128xbf16>, vector<128x128xbf16>, vector<16x128xf32> -> vector<16x128xf32>
    %43 = arith.addf %34, %42 : vector<16x128xf32>
    %c0_44 = arith.constant 0 : index
    %c1_45 = arith.constant 1 : index
    %c0_46 = arith.constant 0 : index
    %c0_47 = arith.constant 0 : index
    %44 = vector.load %arg3[%c0_44, %c1_45, %c0_46, %c0_47] : memref<1x4x5x128xbf16, #tpu.memory_space<vmem>>, vector<1x3x4x128xbf16>
    %45 = vector.shape_cast %44 : vector<1x3x4x128xbf16> to vector<3x4x128xbf16>
    %c0_48 = arith.constant 0 : index
    %c0_49 = arith.constant 0 : index
    %c0_50 = arith.constant 0 : index
    %c0_51 = arith.constant 0 : index
    %46 = vector.load %arg7[%c0_48, %c0_49, %c0_50, %c0_51] : memref<1x1x5x128xbf16, #tpu.memory_space<vmem>>, vector<1x1x4x128xbf16>
    %47 = vector.shape_cast %46 : vector<1x1x4x128xbf16> to vector<1x4x128xbf16>
    %48 = tpu.concatenate %45, %47 in 0 : vector<3x4x128xbf16>, vector<1x4x128xbf16> -> vector<4x4x128xbf16>
    %49 = vector.shape_cast %48 : vector<4x4x128xbf16> to vector<16x128xbf16>
    %c896 = arith.constant 896 : index
    %c0_52 = arith.constant 0 : index
    %50 = vector.load %arg8[%c896, %c0_52] : memref<1152x128xbf16, #tpu.memory_space<vmem>>, vector<128x128xbf16>
    %cst_53 = arith.constant dense<0.000000e+00> : vector<16x128xf32>
    %51 = tpu.matmul %49, %50, %cst_53 {dimension_numbers = #tpu.dot_dimension_numbers<[1], [0], [0], [1], [0, 0, 1, 1], [], []>} : vector<16x128xbf16>, vector<128x128xbf16>, vector<16x128xf32> -> vector<16x128xf32>
    %52 = arith.addf %43, %51 : vector<16x128xf32>
    %c0_54 = arith.constant 0 : index
    %c1_55 = arith.constant 1 : index
    %c1_56 = arith.constant 1 : index
    %c0_57 = arith.constant 0 : index
    %53 = vector.load %arg2[%c0_54, %c1_55, %c1_56, %c0_57] : memref<1x4x5x128xbf16, #tpu.memory_space<vmem>>, vector<1x3x4x128xbf16>
    %54 = vector.shape_cast %53 : vector<1x3x4x128xbf16> to vector<3x4x128xbf16>
    %c0_58 = arith.constant 0 : index
    %c0_59 = arith.constant 0 : index
    %c1_60 = arith.constant 1 : index
    %c0_61 = arith.constant 0 : index
    %55 = vector.load %arg6[%c0_58, %c0_59, %c1_60, %c0_61] : memref<1x1x5x128xbf16, #tpu.memory_space<vmem>>, vector<1x1x4x128xbf16>
    %56 = vector.shape_cast %55 : vector<1x1x4x128xbf16> to vector<1x4x128xbf16>
    %57 = tpu.concatenate %54, %56 in 0 : vector<3x4x128xbf16>, vector<1x4x128xbf16> -> vector<4x4x128xbf16>
    %58 = vector.shape_cast %57 : vector<4x4x128xbf16> to vector<16x128xbf16>
    %c1024 = arith.constant 1024 : index
    %c0_62 = arith.constant 0 : index
    %59 = vector.load %arg8[%c1024, %c0_62] : memref<1152x128xbf16, #tpu.memory_space<vmem>>, vector<128x128xbf16>
    %cst_63 = arith.constant dense<0.000000e+00> : vector<16x128xf32>
    %60 = tpu.matmul %58, %59, %cst_63 {dimension_numbers = #tpu.dot_dimension_numbers<[1], [0], [0], [1], [0, 0, 1, 1], [], []>} : vector<16x128xbf16>, vector<128x128xbf16>, vector<16x128xf32> -> vector<16x128xf32>
    %61 = arith.addf %52, %60 : vector<16x128xf32>
    %c0_64 = arith.constant 0 : index
    %c0_65 = arith.constant 0 : index
    %62 = vector.load %arg9[%c0_64, %c0_65] : memref<1x128xf32, #tpu.memory_space<vmem>>, vector<1x128xf32>
    %63 = vector.broadcast %62 : vector<1x128xf32> to vector<16x128xf32>
    %64 = arith.addf %61, %63 : vector<16x128xf32>
    %65 = vector.shape_cast %64 : vector<16x128xf32> to vector<4x4x128xf32>
    %c0_66 = arith.constant 0 : index
    %c0_67 = arith.constant 0 : index
    %c0_68 = arith.constant 0 : index
    %c0_69 = arith.constant 0 : index
    %66 = vector.load %arg10[%c0_66, %c0_67, %c0_68, %c0_69] : memref<1x4x4x128xf32, #tpu.memory_space<vmem>>, vector<1x4x4x128xf32>
    %67 = vector.shape_cast %66 : vector<1x4x4x128xf32> to vector<4x4x128xf32>
    %68 = vector.shape_cast %65 : vector<4x4x128xf32> to vector<1x4x4x128xf32>
    tpu.vector_store %arg10[%c0_66, %c0_67, %c0_68, %c0_69], %68 {strides = array<i32>} : memref<1x4x4x128xf32, #tpu.memory_space<vmem>>, vector<1x4x4x128xf32>,
    return
  }
  func.func @transform_0(%arg0: i32, %arg1: i32) -> (i32, i32, i32, i32) {
    %c0_i32 = arith.constant 0 : i32
    %c0_i32_0 = arith.constant 0 : i32
    %c0_i32_1 = arith.constant 0 : i32
    return %arg0, %arg1, %c0_i32, %c0_i32_0 : i32, i32, i32, i32
  }
  func.func @transform_1(%arg0: i32, %arg1: i32) -> (i32, i32, i32, i32) {
    %c0_i32 = arith.constant 0 : i32
    %c0_i32_0 = arith.constant 0 : i32
    %c0_i32_1 = arith.constant 0 : i32
    return %arg0, %arg1, %c0_i32, %c0_i32_0 : i32, i32, i32, i32
  }
  func.func @transform_2(%arg0: i32, %arg1: i32) -> (i32, i32, i32, i32) {
    %c0_i32 = arith.constant 0 : i32
    %c0_i32_0 = arith.constant 0 : i32
    %c0_i32_1 = arith.constant 0 : i32
    return %arg0, %arg1, %c0_i32, %c0_i32_0 : i32, i32, i32, i32
  }
  func.func @transform_3(%arg0: i32, %arg1: i32) -> (i32, i32, i32, i32) {
    %c0_i32 = arith.constant 0 : i32
    %c0_i32_0 = arith.constant 0 : i32
    %c0_i32_1 = arith.constant 0 : i32
    return %arg0, %arg1, %c0_i32, %c0_i32_0 : i32, i32, i32, i32
  }
  func.func @transform_4(%arg0: i32, %arg1: i32) -> (i32, i32, i32, i32) {
    %c0_i32 = arith.constant 0 : i32
    %c0_i32_0 = arith.constant 0 : i32
    %c0_i32_1 = arith.constant 0 : i32
    return %arg0, %arg1, %c0_i32, %c0_i32_0 : i32, i32, i32, i32
  }
  func.func @transform_5(%arg0: i32, %arg1: i32) -> (i32, i32, i32, i32) {
    %c0_i32 = arith.constant 0 : i32
    %c0_i32_0 = arith.constant 0 : i32
    %c0_i32_1 = arith.constant 0 : i32
    return %arg0, %arg1, %c0_i32, %c0_i32_0 : i32, i32, i32, i32
  }
  func.func @transform_6(%arg0: i32, %arg1: i32) -> (i32, i32) {
    %c0_i32 = arith.constant 0 : i32
    %c0_i32_0 = arith.constant 0 : i32
    %c0_i32_1 = arith.constant 0 : i32
    return %c0_i32, %c0_i32_0 : i32, i32
  }
  func.func @transform_7(%arg0: i32, %arg1: i32) -> (i32, i32) {
    %c0_i32 = arith.constant 0 : i32
    %c0_i32_0 = arith.constant 0 : i32
    %c0_i32_1 = arith.constant 0 : i32
    return %c0_i32, %c0_i32_0 : i32, i32
  }
  func.func @transform_8(%arg0: i32, %arg1: i32) -> (i32, i32, i32, i32) {
    %c0_i32 = arith.constant 0 : i32
    %c0_i32_0 = arith.constant 0 : i32
    %c0_i32_1 = arith.constant 0 : i32
    return %arg0, %arg1, %c0_i32, %c0_i32_0 : i32, i32, i32, i32
  }
}

</mosaic_0001>

<bundles_post_ra>
// kernel: last_level_p6p7_forward.2
= control target key start
LH: loop header
LB: loop body
LE: loop exit
PB: predicated region body
PF: predicated region fallthrough
CT: control target
= control target key end

     0   :  { %s2563_s30 = smov 0   ;;  %s2565_s10 = smov 0   ;;  %s2972_s0 = inlined_call_operand.vmem [shape: bf16[2,9,9,32], index: 0, kind: input, shape index: {}]   ;;  %s2973_s1 = inlined_call_operand.vmem [shape: bf16[2,9,9,32], index: 1, kind: input, shape index: {}]   ;;  %s2974_s2 = inlined_call_operand.vmem [shape: bf16[2,9,9,32], index: 2, kind: input, shape index: {}]   ;;  %s2975_s3 = inlined_call_operand.vmem [shape: bf16[2,9,9,32], index: 3, kind: input, shape index: {}]   ;;  %s2976_s4 = inlined_call_operand.vmem [shape: bf16[2,1,9,32], index: 4, kind: input, shape index: {}]   ;;  %s2977_s5 = inlined_call_operand.vmem [shape: bf16[2,1,9,32], index: 5, kind: input, shape index: {}]   ;;  %s2978_s6 = inlined_call_operand.vmem [shape: bf16[288,128], index: 6, kind: input, shape index: {}]   ;;  %s2979_s7 = inlined_call_operand.vmem [shape: f32[1,128], index: 7, kind: input, shape index: {}]   ;;  %s2980_s8 = inlined_call_operand.vmem [shape: f32[2,8,8,128], index: 8, kind: output, shape index: {0}]   ;;  %s2981_s9 = inlined_call_operand.vmem [shape: bf16[2,8,8,128], index: 9, kind: output, shape index: {1}]  }
   0x1   :  { %s2567_s11 = smov 0  }
   0x2 LB: > { %s32_s12 = sadd.s32 1, %s2507_s10  ;;  %p2141_p0 = scmp.ge.s32.totalorder %s2511_s11, 1  ;;  %s2511_s11 = sphi %s2567_s11, %s20_s11   ;;  %s2507_s10 = sphi %s2565_s10, %s2985_s10   ;;  %s2503_s30 = sphi %s2563_s30, %s2984_s30  }
   0x3   : > { %p34_p1 = scmp.ge.s32.totalorder %s32_s12, 2  ;;  %p440_p2 = scmp.lt.s32.totalorder %s2511_s11, 3 }
   0x5   : > { %s2987_s12 = smov (%p34_p1, %s32_s12), 0  ;;  %p441_p3 = pnand %p2141_p0, %p440_p2 }
   0x6   : > { %p568_p4 = scmp.lt.s32.totalorder (!%p441_p3), %s2503_s30, 1 }
   0x7   : > { %444 = sbr.rel (%p441_p3) target bundleno = 302 (0x12e), region = 52 }
   0xc   : > { %v2403_v0 = vld [vmem:[%s2978_s6 + $0x18] sm:$0xff]  ;;  %v2402_v1 = vld [vmem:[%s2978_s6 + $0x10] sm:$0xff]  ;;  %s2989_s30 = smov (!%p568_p4, %s2503_s30), 1  ;;  %v2405_v2 = vld [vmem:[%s2978_s6 + $0x28] sm:$0xff]  ;;  %vm741_vm0 = vcmask 261120  }
   0xd   : > { %2457 = vmatpush.bf16.msra.mxu1 %v2403_v0  ;;  %2458 = vmatpush.bf16.msra.mxu2 %v2403_v0  ;;  %s2590_s17 = smul.u32 72, %s2989_s30  ;;  %v2411_v3 = vld [vmem:[%s2978_s6 + $0x38] sm:$0xff]  ;;  %v2397_v4 = vld [vmem:[%s2978_s6 + $0x8] sm:$0xff]  ;;  %v2404_v6 = vld [vmem:[%s2978_s6 + $0x20] sm:$0xff]  ;;  %vm872_vm1 = vsmask.f32 3328 }
   0xe   : > { %2459 = vmatpush.bf16.msra.mxu3 %v2403_v0  ;;  %760 = vmatpush.bf16.msra.mxu0 %v2403_v0  ;;  %v2417_v5 = vld [vmem:[%s2978_s6 + $0x48] sm:$0xff]  ;;  %v2410_v10 = vld [vmem:[%s2978_s6 + $0x30] sm:$0xff]  ;;  %v2396_v11 = vld [vmem:[%s2978_s6] sm:$0xff]  ;;  %vm873_vm2 = vsmask.f32 7440  ;;  %s2388_s15 = sshll.u32 %s2989_s30, 3 }
   0xf   : > { %s2608_s28 = scalar_lea.vmem %s2973_s1, %s2590_s17  ;;  %s2617_s16 = scalar_lea.vmem %s2972_s0, %s2590_s17  ;;  %v2416_v16 = vld [vmem:[%s2978_s6 + $0x40] sm:$0xff]  ;;  %v2425_v17 = vld [vmem:[%s2978_s6 + $0x68] sm:$0xff]  ;;  %v2431_v22 = vld [vmem:[%s2978_s6 + $0x78] sm:$0xff] }
  0x10   : > { %v2160_v7 = vld [vmem:[%s2608_s28 + $0x10] sm:$0xf]  ;;  %v2399_v8 = vld [vmem:[%s2608_s28 + $0x14] sm:$0xf0]  ;;  %v2164_v9 = vld [vmem:[%s2608_s28 + $0x20] sm:$0xf]  ;;  %s2661_s20 = scalar_lea.vmem %s2974_s2, %s2590_s17  ;;  %s2673_s23 = scalar_lea.vmem %s2975_s3, %s2590_s17 }
  0x11   : > { %2460 = vmatpush.bf16.msra.mxu1 %v2402_v1  ;;  %2461 = vmatpush.bf16.msra.mxu2 %v2402_v1  ;;  %v2161_v12 = vor.u32 %v2399_v8, %v2160_v7  ;;  %v2400_v13 = vld [vmem:[%s2608_s28 + $0x24] sm:$0xf0]  ;;  %v2168_v14 = vld [vmem:[%s2608_s28 + $0x30] sm:$0xf]  ;;  %v2401_v15 = vld [vmem:[%s2608_s28 + $0x34] sm:$0xf0]  ;;  %s2813_s21 = scalar_lea.vmem %s2976_s4, %s2388_s15 }
  0x12   : > { %2462 = vmatpush.bf16.msra.mxu3 %v2402_v1  ;;  %761 = vmatpush.bf16.msra.mxu0 %v2402_v1  ;;  %v2165_v18 = vor.u32 %v2400_v13, %v2164_v9  ;;  %v2169_v19 = vor.u32 %v2401_v15, %v2168_v14  ;;  %v2156_v20 = vld [vmem:[%s2608_s28] sm:$0xf]  ;;  %v2398_v21 = vld [vmem:[%s2608_s28 + $0x4] sm:$0xf0]  ;;  %v857_v25 = vld [vmem:[%s2617_s16 + $0x4] sm:$0x1] }
  0x13   : > { %v2157_v23 = vor.u32 %v2398_v21, %v2156_v20  ;;  %v856_v24 = vld [vmem:[%s2617_s16] sm:$0xf]  ;;  %v2419_v26 = vld [vmem:[%s2978_s6 + $0x58] sm:$0xff]  ;;  %v858_v27 = vld [vmem:[%s2617_s16 + $0x8] sm:$0xf]  ;;  %v885_v31 = vshll.u32 %v857_v25, 16 }
  0x14   : > { %2179 = vmatmul.msk.bf16.vlgmr.msra.gmra.mxu1 %vm741_vm0, %v2161_v12  ;;  %2180 = vmatmul.msk.bf16.vlgmr.msra.gmra.mxu2 %vm741_vm0, %v2165_v18  ;;  %v859_v28 = vld [vmem:[%s2617_s16 + $0xc] sm:$0x1]  ;;  %v876_v29 = vshrl.u32 %v856_v24, 16  ;;  %v879_v30 = vshll.u32 %v856_v24, 16  ;;  %v890_v32 = vshrl.u32 %v858_v27, 16  ;;  %v893_v33 = vshll.u32 %v858_v27, 16  ;;  %vm2663_vm3 = vmor %vm872_vm1, %vm873_vm2 }
  0x15   : > { %1033 = vmatpush.bf16.msrb.mxu2 %v2405_v2  ;;  %833 = vmatpush.bf16.msrb.mxu1 %v2397_v4  ;;  %v899_v34 = vshll.u32 %v859_v28, 16  ;;  %v2433_v35 = vld [vmem:[%s2978_s6 + $0x88] sm:$0xff]  ;;  %v887_v41 = vrot.slane %v885_v31, 5  ;;  %v860_v42 = vld [vmem:[%s2617_s16 + $0x10] sm:$0xf]  ;;  %v2424_v15 = vld [vmem:[%s2978_s6 + $0x60] sm:$0xff] }
  0x16   : > { %1126 = vmatpush.bf16.msrb.mxu3 %v2411_v3  ;;  %1219 = vmatpush.bf16.msrb.mxu0 %v2417_v5  ;;  %v878_v36 = vrot.slane %v876_v29, 4  ;;  %v881_v37 = vrot.slane %v879_v30, 5  ;;  %v892_v38 = vrot.slane %v890_v32, 4  ;;  %v895_v39 = vrot.slane %v893_v33, 5  ;;  %v862_v46 = vld [vmem:[%s2617_s16 + $0x18] sm:$0xf] }
  0x17   : > { %2181 = vmatmul.msk.bf16.vlgmr.msra.gmra.mxu3 %vm741_vm0, %v2169_v19  ;;  %2178 = vmatmul.msk.bf16.vlgmr.msra.gmra.mxu0 %vm741_vm0, %v2157_v23  ;;  %v901_v45 = vrot.slane %v899_v34, 5  ;;  %v904_v48 = vshrl.u32 %v860_v42, 16  ;;  %v907_v49 = vshll.u32 %v860_v42, 16  ;;  %v2184_v50 = vld [vmem:[%s2617_s16] sm:$0xf]  ;;  %v918_v52 = vshrl.u32 %v862_v46, 16 }
  0x18   : > { %v882_v40 = vor.u32 %v881_v37, %v878_v36  ;;  %v896_v44 = vor.u32 %v895_v39, %v892_v38  ;;  %v921_v53 = vshll.u32 %v862_v46, 16  ;;  %v2392_v54 = vld [vmem:[%s2617_s16 + $0x4] sm:$0xf0]  ;;  %v2224_v56 = vld [vmem:[%s2661_s20] sm:$0xf]  ;;  %v2430_v19 = vld [vmem:[%s2978_s6 + $0x70] sm:$0xff] }
  0x19   : > { %1034 = vmatpush.bf16.msrb.mxu2 %v2404_v6  ;;  %834 = vmatpush.bf16.msrb.mxu1 %v2396_v11  ;;  %v906_v57 = vrot.slane %v904_v48, 4  ;;  %v909_v58 = vrot.slane %v907_v49, 5  ;;  %v2406_v61 = vld [vmem:[%s2661_s20 + $0x4] sm:$0xf0]  ;;  %v861_v62 = vld [vmem:[%s2617_s16 + $0x14] sm:$0x1]  ;;  %v2185_v5 = vor.u32 %v2392_v54, %v2184_v50 }
  0x1a   : > { %1127 = vmatpush.bf16.msrb.mxu3 %v2410_v10  ;;  %1220 = vmatpush.bf16.msrb.mxu0 %v2416_v16  ;;  %v883_v47 = vrot.slane %v882_v40, 4  ;;  %v897_v51 = vrot.slane %v896_v44, 4  ;;  %v920_v63 = vrot.slane %v918_v52, 4  ;;  %v923_v0 = vrot.slane %v921_v53, 5  ;;  %v2252_v2 = vld [vmem:[%s2673_s23] sm:$0xf] }
  0x1b   : > { %v2412_v3 = vld [vmem:[%s2673_s23 + $0x4] sm:$0xf0]  ;;  %v863_v4 = vld [vmem:[%s2617_s16 + $0x1c] sm:$0x1]  ;;  %v2225_v7 = vor.u32 %v2406_v61, %v2224_v56  ;;  %v913_v8 = vshll.u32 %v861_v62, 16  ;;  %v910_v10 = vor.u32 %v909_v58, %v906_v57  ;;  %v2418_v20 = vld [vmem:[%s2978_s6 + $0x50] sm:$0xff] }
  0x1c   : > { %v888_v55 = vsel %vm2663_vm3, %v883_v47, %v887_v41  ;;  %v902_v59 = vsel %vm2663_vm3, %v897_v51, %v901_v45  ;;  %v2253_v9 = vor.u32 %v2412_v3, %v2252_v2  ;;  %v924_v11 = vor.u32 %v923_v0, %v920_v63  ;;  %v864_v14 = vld [vmem:[%s2617_s16 + $0x20] sm:$0xf]  ;;  %v2188_v29 = vld [vmem:[%s2617_s16 + $0x10] sm:$0xf]  ;;  %v2393_v30 = vld [vmem:[%s2617_s16 + $0x14] sm:$0xf0] }
  0x1d   : > { %1518 = vmatpush.bf16.msra.mxu2 %v2425_v17  ;;  %1424 = vmatpush.bf16.msra.mxu1 %v2419_v26  ;;  %v991_v60 = vunpack.c.l.b16 %v888_v55  ;;  %v992_v1 = vunpack.c.l.b16 %v902_v59  ;;  %v927_v12 = vshll.u32 %v863_v4, 16  ;;  %v915_v13 = vrot.slane %v913_v8, 5  ;;  %v2432_v21 = vld [vmem:[%s2978_s6 + $0x80] sm:$0xff]  ;;  %v2228_v33 = vld [vmem:[%s2661_s20 + $0x10] sm:$0xf]  ;;  %s2391_s27 = sshll.u32 %s2989_s30, 5 }
  0x1e   : > { %1612 = vmatpush.bf16.msra.mxu3 %v2431_v22  ;;  %1817 = vmatpush.bf16.msra.mxu0 %v2433_v35  ;;  %v911_v16 = vrot.slane %v910_v10, 4  ;;  %v925_v17 = vrot.slane %v924_v11, 4  ;;  %v866_v22 = vld [vmem:[%s2617_s16 + $0x28] sm:$0xf]  ;;  %v932_v23 = vshrl.u32 %v864_v14, 16  ;;  %v935_v24 = vshll.u32 %v864_v14, 16  ;;  %s2924_s14 = scalar_lea.vmem %s2981_s9, %s2391_s27 }
  0x1f   : > { %v999_v6 = vpack.c.b16 %v992_v1, %v991_v60  ;;  %v929_v18 = vrot.slane %v927_v12, 5  ;;  %v946_v27 = vshrl.u32 %v866_v22, 16  ;;  %v949_v28 = vshll.u32 %v866_v22, 16  ;;  %v2407_v34 = vld [vmem:[%s2661_s20 + $0x14] sm:$0xf0] }
  0x20   : > { %v916_v25 = vsel %vm2663_vm3, %v911_v16, %v915_v13  ;;  %v2256_v35 = vld [vmem:[%s2673_s23 + $0x10] sm:$0xf]  ;;  %v2413_v36 = vld [vmem:[%s2673_s23 + $0x14] sm:$0xf0]  ;;  %v934_v37 = vrot.slane %v932_v23, 4  ;;  %v937_v38 = vrot.slane %v935_v24, 5  ;;  %v2189_v44 = vor.u32 %v2393_v30, %v2188_v29 }
  0x21   : > { %1519 = vmatpush.bf16.msra.mxu2 %v2424_v15  ;;  %1425 = vmatpush.bf16.msra.mxu1 %v2418_v20  ;;  %v930_v26 = vsel %vm2663_vm3, %v925_v17, %v929_v18  ;;  %v993_v31 = vunpack.c.l.b16 %v916_v25  ;;  %v948_v39 = vrot.slane %v946_v27, 4  ;;  %v951_v40 = vrot.slane %v949_v28, 5  ;;  %v865_v41 = vld [vmem:[%s2617_s16 + $0x24] sm:$0x1]  ;;  %v867_v42 = vld [vmem:[%s2617_s16 + $0x2c] sm:$0x1] }
  0x22   : > { %1613 = vmatpush.bf16.msra.mxu3 %v2430_v19  ;;  %1818 = vmatpush.bf16.msra.mxu0 %v2432_v21  ;;  %v994_v32 = vunpack.c.l.b16 %v930_v26  ;;  %v2229_v46 = vor.u32 %v2407_v34, %v2228_v33  ;;  %v2257_v47 = vor.u32 %v2413_v36, %v2256_v35  ;;  %v938_v48 = vor.u32 %v937_v38, %v934_v37  ;;  %v868_v52 = vld [vmem:[%s2617_s16 + $0x30] sm:$0xf]  ;;  %v870_v53 = vld [vmem:[%s2617_s16 + $0x38] sm:$0xf]  ;;  %v869_v4 = vld [vmem:[%s2617_s16 + $0x34] sm:$0x1] }
  0x23   : > { %v941_v49 = vshll.u32 %v865_v41, 16  ;;  %v952_v50 = vor.u32 %v951_v40, %v948_v39  ;;  %v955_v51 = vshll.u32 %v867_v42, 16  ;;  %v960_v58 = vshrl.u32 %v868_v52, 16  ;;  %v2232_v10 = vld [vmem:[%s2661_s20 + $0x20] sm:$0xf] }
  0x24   : > { %2206 = vmatmul.msk.bf16.vlgmr.msrb.gmra.mxu1 %vm741_vm0, %v2185_v5  ;;  %2218 = vmatmul.msk.bf16.vlgmr.msrb.gmra.mxu2 %vm741_vm0, %v999_v6  ;;  %v1000_v45 = vpack.c.b16 %v994_v32, %v993_v31  ;;  %v939_v54 = vrot.slane %v938_v48, 4  ;;  %v963_v59 = vshll.u32 %v868_v52, 16  ;;  %v974_v60 = vshrl.u32 %v870_v53, 16  ;;  %v871_v5 = vld [vmem:[%s2617_s16 + $0x3c] sm:$0x1] }
  0x25   : > { %v943_v55 = vrot.slane %v941_v49, 5  ;;  %v953_v56 = vrot.slane %v952_v50, 4  ;;  %v957_v57 = vrot.slane %v955_v51, 5  ;;  %v977_v61 = vshll.u32 %v870_v53, 16  ;;  %v2192_v6 = vld [vmem:[%s2617_s16 + $0x20] sm:$0xf] }
  0x26   : > { %v962_v0 = vrot.slane %v960_v58, 4  ;;  %v965_v1 = vrot.slane %v963_v59, 5  ;;  %v976_v2 = vrot.slane %v974_v60, 4  ;;  %v2408_v11 = vld [vmem:[%s2661_s20 + $0x24] sm:$0xf0]  ;;  %v969_v15 = vshll.u32 %v869_v4, 16 }
  0x27   : > { %2246 = vmatmul.msk.bf16.vlgmr.msrb.gmra.mxu3 %vm741_vm0, %v2225_v7  ;;  %2274 = vmatmul.msk.bf16.vlgmr.msrb.gmra.mxu0 %vm741_vm0, %v2253_v9  ;;  %v944_v62 = vsel %vm2663_vm3, %v939_v54, %v943_v55  ;;  %v958_v63 = vsel %vm2663_vm3, %v953_v56, %v957_v57  ;;  %v979_v3 = vrot.slane %v977_v61, 5  ;;  %v2394_v7 = vld [vmem:[%s2617_s16 + $0x24] sm:$0xf0]  ;;  %v2260_v12 = vld [vmem:[%s2673_s23 + $0x20] sm:$0xf]  ;;  %v983_v17 = vshll.u32 %v871_v5, 16 }
  0x28   : > { %v995_v8 = vunpack.c.l.b16 %v944_v62  ;;  %v996_v9 = vunpack.c.l.b16 %v958_v63  ;;  %v2414_v13 = vld [vmem:[%s2673_s23 + $0x24] sm:$0xf0]  ;;  %v966_v14 = vor.u32 %v965_v1, %v962_v0  ;;  %v2193_v18 = vor.u32 %v2394_v7, %v2192_v6  ;;  %v1250_v26 = vld [vmem:[%s2661_s20] sm:$0xf]  ;;  %v2362_v29 = vld [vmem:[%s2617_s16 + $0x10] sm:$0xf] }
  0x29   : > { %v980_v16 = vor.u32 %v979_v3, %v976_v2  ;;  %v2233_v20 = vor.u32 %v2408_v11, %v2232_v10  ;;  %v2261_v21 = vor.u32 %v2414_v13, %v2260_v12  ;;  %v971_v23 = vrot.slane %v969_v15, 5  ;;  %v1252_v27 = vld [vmem:[%s2661_s20 + $0x8] sm:$0xf]  ;;  %v2196_v40 = vld [vmem:[%s2617_s16 + $0x30] sm:$0xf] }
  0x2a   : > { %v1001_v19 = vpack.c.b16 %v996_v9, %v995_v8  ;;  %v967_v22 = vrot.slane %v966_v14, 4  ;;  %v985_v25 = vrot.slane %v983_v17, 5  ;;  %v2360_v28 = vld [vmem:[%s2617_s16 + $0x8] sm:$0xf]  ;;  %v1267_v32 = vshrl.u32 %v1250_v26, 16 }
  0x2b   : > { %v981_v24 = vrot.slane %v980_v16, 4  ;;  %v1270_v33 = vshll.u32 %v1250_v26, 16  ;;  %v1281_v34 = vshrl.u32 %v1252_v27, 16  ;;  %v1284_v35 = vshll.u32 %v1252_v27, 16  ;;  %v2395_v41 = vld [vmem:[%s2617_s16 + $0x34] sm:$0xf0] }
  0x2c   : > { %v972_v30 = vsel %vm2663_vm3, %v967_v22, %v971_v23  ;;  %v1660_v36 = vshrl.u32 %v2360_v28, 16  ;;  %v1663_v37 = vshll.u32 %v2360_v28, 16  ;;  %v1674_v38 = vshrl.u32 %v2362_v29, 16  ;;  %v1253_v52 = vld [vmem:[%s2661_s20 + $0xc] sm:$0x1] }
  0x2d   : > { %v986_v31 = vsel %vm2663_vm3, %v981_v24, %v985_v25  ;;  %v1677_v39 = vshll.u32 %v2362_v29, 16  ;;  %v997_v42 = vunpack.c.l.b16 %v972_v30  ;;  %v1269_v48 = vrot.slane %v1267_v32, 4  ;;  %v2361_v57 = vld [vmem:[%s2617_s16 + $0xc] sm:$0x1]  ;;  %v2363_v58 = vld [vmem:[%s2617_s16 + $0x14] sm:$0x1] }
  0x2e   : > { %v1272_v49 = vrot.slane %v1270_v33, 5  ;;  %v1283_v50 = vrot.slane %v1281_v34, 4  ;;  %v1286_v51 = vrot.slane %v1284_v35, 5  ;;  %v1662_v53 = vrot.slane %v1660_v36, 4  ;;  %v2264_v62 = vld [vmem:[%s2673_s23 + $0x30] sm:$0xf] }
  0x2f   : > { %v1665_v54 = vrot.slane %v1663_v37, 5  ;;  %v1676_v55 = vrot.slane %v1674_v38, 4  ;;  %v1679_v56 = vrot.slane %v1677_v39, 5  ;;  %v2197_v59 = vor.u32 %v2395_v41, %v2196_v40  ;;  %v2415_v63 = vld [vmem:[%s2673_s23 + $0x34] sm:$0xf0]  ;;  %s663_s23 = scalar_lea.vmem %s2977_s5, %s2388_s15 }
  0x30   : > { %v1273_v0 = vor.u32 %v1272_v49, %v1269_v48  ;;  %v1287_v2 = vor.u32 %v1286_v51, %v1283_v50  ;;  %v1290_v3 = vshll.u32 %v1253_v52, 16  ;;  %v1669_v5 = vshll.u32 %v2361_v57, 16  ;;  %v1254_v9 = vld [vmem:[%s2661_s20 + $0x10] sm:$0xf]  ;;  %v1256_v10 = vld [vmem:[%s2661_s20 + $0x18] sm:$0xf] }
  0x31   : > { %v1666_v4 = vor.u32 %v1665_v54, %v1662_v53  ;;  %v1680_v6 = vor.u32 %v1679_v56, %v1676_v55  ;;  %v1683_v7 = vshll.u32 %v2363_v58, 16  ;;  %v2265_v8 = vor.u32 %v2415_v63, %v2264_v62  ;;  %v2364_v23 = vld [vmem:[%s2617_s16 + $0x18] sm:$0xf]  ;;  %v2366_v24 = vld [vmem:[%s2617_s16 + $0x20] sm:$0xf] }
  0x32   : > { %v1274_v11 = vrot.slane %v1273_v0, 4  ;;  %v1288_v13 = vrot.slane %v1287_v2, 4  ;;  %v1292_v14 = vrot.slane %v1290_v3, 5  ;;  %v1671_v16 = vrot.slane %v1669_v5, 5  ;;  %v1255_v29 = vld [vmem:[%s2661_s20 + $0x14] sm:$0x1] }
  0x33   : > { %v1667_v15 = vrot.slane %v1666_v4, 4  ;;  %v1681_v17 = vrot.slane %v1680_v6, 4  ;;  %v1312_v22 = vshll.u32 %v1256_v10, 16  ;;  %v1257_v34 = vld [vmem:[%s2661_s20 + $0x1c] sm:$0x1]  ;;  %v1688_v35 = vshrl.u32 %v2364_v23, 16 }
  0x34   : > { %2207 = vmatmul.msk.bf16.gmra.mxu1 %vm741_vm0, %v2189_v44  ;;  %2219 = vmatmul.msk.bf16.gmra.mxu2 %vm741_vm0, %v1000_v45  ;;  %v998_v44 = vunpack.c.l.b16 %v986_v31  ;;  %v2236_v45 = vld [vmem:[%s2661_s20 + $0x30] sm:$0xf]  ;;  %v1293_v26 = vsel %vm2663_vm3, %v1288_v13, %v1292_v14  ;;  %v1691_v36 = vshll.u32 %v2364_v23, 16  ;;  %v1702_v37 = vshrl.u32 %v2366_v24, 16  ;;  %v2299_v41 = vld [vmem:[%s2617_s16 + $0x8] sm:$0xf] }
  0x35   : > { %v1672_v27 = vsel %vm2663_vm3, %v1667_v15, %v1671_v16  ;;  %v1314_v33 = vrot.slane %v1312_v22, 5  ;;  %v1705_v38 = vshll.u32 %v2366_v24, 16  ;;  %v1383_v40 = vunpack.c.l.b16 %v1293_v26  ;;  %v2365_v57 = vld [vmem:[%s2617_s16 + $0x1c] sm:$0x1]  ;;  %v2367_v58 = vld [vmem:[%s2617_s16 + $0x24] sm:$0x1] }
  0x36   : > { %v1002_v60 = vpack.c.b16 %v998_v44, %v997_v42  ;;  %v2420_v42 = vld [vmem:[%s2617_s16 + $0xc] sm:$0xf0]  ;;  %v1775_v44 = vunpack.c.l.b16 %v1672_v27  ;;  %v1304_v49 = vshll.u32 %v1255_v29, 16  ;;  %v1318_v51 = vshll.u32 %v1257_v34, 16  ;;  %v1258_v6 = vld [vmem:[%s2661_s20 + $0x20] sm:$0xf] }
  0x37   : > { %2247 = vmatmul.msk.bf16.gmra.mxu3 %vm741_vm0, %v2229_v46  ;;  %2275 = vmatmul.msk.bf16.gmra.mxu0 %vm741_vm0, %v2257_v47  ;;  %v2409_v46 = vld [vmem:[%s2661_s20 + $0x34] sm:$0xf0]  ;;  %v1251_v47 = vld [vmem:[%s2661_s20 + $0x4] sm:$0x1]  ;;  %v1690_v52 = vrot.slane %v1688_v35, 4  ;;  %v1693_v53 = vrot.slane %v1691_v36, 5 }
  0x38   : > { %v2237_v61 = vor.u32 %v2409_v46, %v2236_v45  ;;  %v1276_v1 = vshll.u32 %v1251_v47, 16  ;;  %v2334_v46 = vld [vmem:[%s2608_s28 + $0x8] sm:$0xf]  ;;  %v2426_v47 = vld [vmem:[%s2608_s28 + $0xc] sm:$0xf0]  ;;  %v1704_v54 = vrot.slane %v1702_v37, 4 }
  0x39   : > { %v1707_v55 = vrot.slane %v1705_v38, 5  ;;  %v1306_v63 = vrot.slane %v1304_v49, 5  ;;  %v1694_v2 = vor.u32 %v1693_v53, %v1690_v52  ;;  %v1697_v3 = vshll.u32 %v2365_v57, 16  ;;  %v2370_v15 = vld [vmem:[%s2617_s16 + $0x30] sm:$0xf] }
  0x3a   : > { %v1278_v12 = vrot.slane %v1276_v1, 5  ;;  %v1320_v1 = vrot.slane %v1318_v51, 5  ;;  %v1711_v5 = vshll.u32 %v2367_v58, 16  ;;  %v1323_v16 = vshrl.u32 %v1258_v6, 16  ;;  %v2421_v29 = vld [vmem:[%s2617_s16 + $0x1c] sm:$0xf0] }
  0x3b   : > { %v1708_v4 = vor.u32 %v1707_v55, %v1704_v54  ;;  %v1730_v22 = vshrl.u32 %v2370_v15, 16  ;;  %v1733_v23 = vshll.u32 %v2370_v15, 16  ;;  %v1259_v35 = vld [vmem:[%s2661_s20 + $0x24] sm:$0x1]  ;;  %v1261_v36 = vld [vmem:[%s2661_s20 + $0x2c] sm:$0x1] }
  0x3c   : > { %v1279_v25 = vsel %vm2663_vm3, %v1274_v11, %v1278_v12  ;;  %v1695_v11 = vrot.slane %v1694_v2, 4  ;;  %v1699_v12 = vrot.slane %v1697_v3, 5  ;;  %v1713_v14 = vrot.slane %v1711_v5, 5  ;;  %v1262_v3 = vld [vmem:[%s2661_s20 + $0x30] sm:$0xf] }
  0x3d   : > { %v1382_v39 = vunpack.c.l.b16 %v1279_v25  ;;  %v1709_v13 = vrot.slane %v1708_v4, 4  ;;  %v1332_v49 = vshll.u32 %v1259_v35, 16  ;;  %v1346_v51 = vshll.u32 %v1261_v36, 16  ;;  %v1264_v4 = vld [vmem:[%s2661_s20 + $0x38] sm:$0xf] }
  0x3e   : > { %v1700_v26 = vsel %vm2663_vm3, %v1695_v11, %v1699_v12  ;;  %v1365_v11 = vshrl.u32 %v1264_v4, 16  ;;  %v1368_v12 = vshll.u32 %v1264_v4, 16  ;;  %v2346_v4 = vld [vmem:[%s2608_s28 + $0x38] sm:$0xf] }
  0x3f   : > { %v1390_v56 = vpack.c.b16 %v1383_v40, %v1382_v39  ;;  %v1714_v27 = vsel %vm2663_vm3, %v1709_v13, %v1713_v14  ;;  %v2427_v39 = vld [vmem:[%s2608_s28 + $0x1c] sm:$0xf0]  ;;  %v1777_v40 = vunpack.c.l.b16 %v1700_v26 }
  0x44   : > { %2208 = vmatmul.msk.bf16.gmra.mxu1 %vm741_vm0, %v2193_v18  ;;  %2220 = vmatmul.msk.bf16.gmra.mxu2 %vm741_vm0, %v1001_v19  ;;  %v1685_v18 = vrot.slane %v1683_v7, 5  ;;  %v1295_v19 = vshrl.u32 %v1254_v9, 16  ;;  %v1260_v7 = vld [vmem:[%s2661_s20 + $0x28] sm:$0xf] }
  0x46   : > { %v1686_v28 = vsel %vm2663_vm3, %v1681_v17, %v1685_v18  ;;  %v1297_v30 = vrot.slane %v1295_v19, 4  ;;  %v1326_v17 = vshll.u32 %v1258_v6, 16  ;;  %v1337_v18 = vshrl.u32 %v1260_v7, 16 }
  0x47   : > { %2248 = vmatmul.msk.bf16.gmra.mxu3 %vm741_vm0, %v2233_v20  ;;  %2276 = vmatmul.msk.bf16.gmra.mxu0 %vm741_vm0, %v2261_v21  ;;  %v1298_v20 = vshll.u32 %v1254_v9, 16  ;;  %v1309_v21 = vshrl.u32 %v1256_v10, 16  ;;  %v1776_v45 = vunpack.c.l.b16 %v1686_v28  ;;  %v2368_v10 = vld [vmem:[%s2617_s16 + $0x28] sm:$0xf]  ;;  %v1340_v19 = vshll.u32 %v1260_v7, 16 }
  0x48   : > { %v2303_v28 = vld [vmem:[%s2617_s16 + $0x18] sm:$0xf]  ;;  %v1657_v7 = vld [vmem:[%s2813_s21] sm:$0xf] }
  0x49   : > { %v1300_v31 = vrot.slane %v1298_v20, 5  ;;  %v1311_v32 = vrot.slane %v1309_v21, 4  ;;  %v1716_v20 = vshrl.u32 %v2368_v10, 16  ;;  %v1719_v21 = vshll.u32 %v2368_v10, 16 }
  0x4a   : > { %v1342_v34 = vrot.slane %v1340_v19, 5  ;;  %v2304_v52 = vor.u32 %v2421_v29, %v2303_v28  ;;  %v1354_v10 = vshll.u32 %v1262_v3, 16  ;;  %v1758_v15 = vshrl.u32 %v1657_v7, 16 }
  0x4b   : > { %v1301_v48 = vor.u32 %v1300_v31, %v1297_v30  ;;  %v1315_v50 = vor.u32 %v1314_v33, %v1311_v32  ;;  %v2338_v30 = vld [vmem:[%s2608_s28 + $0x18] sm:$0xf]  ;;  %v1325_v31 = vrot.slane %v1323_v16, 4  ;;  %v1328_v32 = vrot.slane %v1326_v17, 5 }
  0x4c   : > { %v1339_v33 = vrot.slane %v1337_v18, 4  ;;  %v1718_v37 = vrot.slane %v1716_v20, 4  ;;  %v1721_v38 = vrot.slane %v1719_v21, 5  ;;  %v2339_v53 = vor.u32 %v2427_v39, %v2338_v30  ;;  %v2307_v21 = vld [vmem:[%s2617_s16 + $0x28] sm:$0xf] }
  0x4d   : > { %v1302_v62 = vrot.slane %v1301_v48, 4  ;;  %v1316_v0 = vrot.slane %v1315_v50, 4  ;;  %v1329_v48 = vor.u32 %v1328_v32, %v1325_v31  ;;  %v1761_v16 = vshll.u32 %v1657_v7, 16  ;;  %v1263_v31 = vld [vmem:[%s2661_s20 + $0x34] sm:$0x1] }
  0x4e   : > { %v1343_v50 = vor.u32 %v1342_v34, %v1339_v33  ;;  %v1722_v54 = vor.u32 %v1721_v38, %v1718_v37  ;;  %v1356_v26 = vrot.slane %v1354_v10, 5  ;;  %v1370_v28 = vrot.slane %v1368_v12, 5  ;;  %v1265_v32 = vld [vmem:[%s2661_s20 + $0x3c] sm:$0x1] }
  0x4f   : > { %v1321_v9 = vsel %vm2663_vm3, %v1316_v0, %v1320_v1  ;;  %v1760_v33 = vrot.slane %v1758_v15, 4  ;;  %v1763_v34 = vrot.slane %v1761_v16, 5 }
  0x50   : > { %v1385_v25 = vunpack.c.l.b16 %v1321_v9  ;;  %v1351_v9 = vshrl.u32 %v1262_v3, 16  ;;  %v2423_v3 = vld [vmem:[%s2813_s21 - $0x4] sm:$0xf0] }
  0x54   : > { %2209 = vmatmul.msk.bf16.gmra.mxu1 %vm741_vm0, %v2197_v59  ;;  %2221 = vmatmul.msk.bf16.gmra.mxu2 %vm741_vm0, %v1002_v60  ;;  %v2300_v59 = vor.u32 %v2420_v42, %v2299_v41  ;;  %v2335_v60 = vor.u32 %v2426_v47, %v2334_v46  ;;  %v1778_v41 = vunpack.c.l.b16 %v1714_v27  ;;  %v2369_v42 = vld [vmem:[%s2617_s16 + $0x2c] sm:$0x1]  ;;  %v2371_v47 = vld [vmem:[%s2617_s16 + $0x34] sm:$0x1]  ;;  %v1367_v27 = vrot.slane %v1365_v11, 4 }
  0x55   : > { %v1725_v55 = vshll.u32 %v2369_v42, 16  ;;  %v1739_v58 = vshll.u32 %v2371_v47, 16 }
  0x57   : > { %2249 = vmatmul.msk.bf16.gmra.mxu3 %vm741_vm0, %v2237_v61  ;;  %2277 = vmatmul.msk.bf16.gmra.mxu0 %vm741_vm0, %v2265_v8  ;;  %v1783_v61 = vpack.c.b16 %v1776_v45, %v1775_v44  ;;  %v1307_v8 = vsel %vm2663_vm3, %v1302_v62, %v1306_v63  ;;  %v1732_v44 = vrot.slane %v1730_v22, 4  ;;  %v1735_v45 = vrot.slane %v1733_v23, 5  ;;  %v2422_v22 = vld [vmem:[%s2617_s16 + $0x2c] sm:$0xf0]  ;;  %v2342_v23 = vld [vmem:[%s2608_s28 + $0x28] sm:$0xf] }
  0x58   : > { %v1384_v24 = vunpack.c.l.b16 %v1307_v8  ;;  %v1348_v62 = vrot.slane %v1346_v51, 5  ;;  %v1723_v63 = vrot.slane %v1722_v54, 4  ;;  %v1727_v0 = vrot.slane %v1725_v55, 5  ;;  %v2372_v8 = vld [vmem:[%s2617_s16 + $0x38] sm:$0xf] }
  0x59   : > { %v1736_v57 = vor.u32 %v1735_v45, %v1732_v44  ;;  %v1741_v2 = vrot.slane %v1739_v58, 5  ;;  %v1744_v17 = vshrl.u32 %v2372_v8, 16  ;;  %v1747_v18 = vshll.u32 %v2372_v8, 16 }
  0x5a   : > { %v1391_v46 = vpack.c.b16 %v1385_v25, %v1384_v24  ;;  %v1728_v13 = vsel %vm2663_vm3, %v1723_v63, %v1727_v0  ;;  %v2428_v24 = vld [vmem:[%s2608_s28 + $0x2c] sm:$0xf0]  ;;  %v1353_v25 = vrot.slane %v1351_v9, 4  ;;  %v2308_v38 = vor.u32 %v2422_v22, %v2307_v21  ;;  %s2390_s28 = sshll.u32 %s2989_s30, 6 }
  0x5b   : > { %v1737_v1 = vrot.slane %v1736_v57, 4  ;;  %v1779_v29 = vunpack.c.l.b16 %v1728_v13  ;;  %v1746_v35 = vrot.slane %v1744_v17, 4  ;;  %v1749_v36 = vrot.slane %v1747_v18, 5  ;;  %s2913_s26 = scalar_lea.vmem %s2980_s8, %s2390_s28 }
  0x5c   : > { %v2343_v39 = vor.u32 %v2428_v24, %v2342_v23  ;;  %v1357_v42 = vor.u32 %v1356_v26, %v1353_v25  ;;  %v1360_v44 = vshll.u32 %v1263_v31, 16  ;;  %v1371_v45 = vor.u32 %v1370_v28, %v1367_v27 }
  0x5d   : > { %v1742_v14 = vsel %vm2663_vm3, %v1737_v1, %v1741_v2  ;;  %v1764_v51 = vor.u32 %v1763_v34, %v1760_v33  ;;  %v2311_v2 = vld [vmem:[%s2617_s16 + $0x38] sm:$0xf] }
  0x5e   : > { %v1780_v30 = vunpack.c.l.b16 %v1742_v14  ;;  %v1372_v54 = vrot.slane %v1371_v45, 4  ;;  %v2312_v10 = vor.u32 %v2423_v3, %v2311_v2 }
  0x60   : > { %v1785_v47 = vpack.c.b16 %v1780_v30, %v1779_v29 }
  0x64   : > { %2286 = vmatmul.msk.bf16.vlgmr.msra.gmra.mxu1 %vm741_vm0, %v1390_v56  ;;  %2321 = vmatmul.msk.bf16.vlgmr.msra.gmra.mxu2 %vm741_vm0, %v2300_v59  ;;  %v1784_v56 = vpack.c.b16 %v1778_v41, %v1777_v40  ;;  %v1330_v59 = vrot.slane %v1329_v48, 4  ;;  %v1658_v40 = vld [vmem:[%s2813_s21 + $0x4] sm:$0x1]  ;;  %v2373_v41 = vld [vmem:[%s2617_s16 + $0x3c] sm:$0x1] }
  0x65   : > { %v1767_v48 = vshll.u32 %v1658_v40, 16 }
  0x67   : > { %2356 = vmatmul.msk.bf16.vlgmr.msra.gmra.mxu3 %vm741_vm0, %v2335_v60  ;;  %2382 = vmatmul.msk.bf16.vlgmr.msra.gmra.mxu0 %vm741_vm0, %v1783_v61  ;;  %v1334_v60 = vrot.slane %v1332_v49, 5  ;;  %v1344_v61 = vrot.slane %v1343_v50, 4  ;;  %v1750_v49 = vor.u32 %v1749_v36, %v1746_v35  ;;  %v1753_v50 = vshll.u32 %v2373_v41, 16 }
  0x69   : > { %v1335_v5 = vsel %vm2663_vm3, %v1330_v59, %v1334_v60  ;;  %v1349_v6 = vsel %vm2663_vm3, %v1344_v61, %v1348_v62  ;;  %v1751_v57 = vrot.slane %v1750_v49, 4  ;;  %v1755_v58 = vrot.slane %v1753_v50, 5 }
  0x6a   : > { %v1386_v19 = vunpack.c.l.b16 %v1335_v5  ;;  %v1387_v20 = vunpack.c.l.b16 %v1349_v6  ;;  %v1765_v59 = vrot.slane %v1764_v51, 4  ;;  %v2429_v5 = vld [vmem:[%s663_s23 - $0x4] sm:$0xf0] }
  0x6b   : > { %v1756_v62 = vsel %vm2663_vm3, %v1751_v57, %v1755_v58  ;;  %v2347_v11 = vor.u32 %v2429_v5, %v2346_v4  ;;  %v2908_v4 = vld [vmem:[%s2979_s7] ss:$0 sm:$0xff] }
  0x6c   : > { %v1392_v37 = vpack.c.b16 %v1387_v20, %v1386_v19  ;;  %v1781_v6 = vunpack.c.l.b16 %v1756_v62 }
  0x74   : > { %2287 = vmatmul.msk.bf16.gmra.mxu1 %vm741_vm0, %v1391_v46  ;;  %2322 = vmatmul.msk.bf16.gmra.mxu2 %vm741_vm0, %v2304_v52  ;;  %v1374_v46 = vshll.u32 %v1265_v32, 16  ;;  %v1358_v52 = vrot.slane %v1357_v42, 4 }
  0x76   : > { %v1376_v55 = vrot.slane %v1374_v46, 5 }
  0x77   : > { %2357 = vmatmul.msk.bf16.gmra.mxu3 %vm741_vm0, %v2339_v53  ;;  %2383 = vmatmul.msk.bf16.gmra.mxu0 %vm741_vm0, %v1784_v56  ;;  %v1362_v53 = vrot.slane %v1360_v44, 5  ;;  %v1769_v56 = vrot.slane %v1767_v48, 5 }
  0x78   : > { %v1377_v61 = vsel %vm2663_vm3, %v1372_v54, %v1376_v55 }
  0x79   : > { %v1363_v60 = vsel %vm2663_vm3, %v1358_v52, %v1362_v53  ;;  %v1770_v63 = vsel %vm2663_vm3, %v1765_v59, %v1769_v56  ;;  %v1389_v1 = vunpack.c.l.b16 %v1377_v61 }
  0x7a   : > { %v1388_v0 = vunpack.c.l.b16 %v1363_v60  ;;  %v1782_v7 = vunpack.c.l.b16 %v1770_v63 }
  0x7c   : > { %v1393_v8 = vpack.c.b16 %v1389_v1, %v1388_v0  ;;  %v1786_v12 = vpack.c.b16 %v1782_v7, %v1781_v6 }
  0x84   : > { %2288 = vmatmul.msk.bf16.gmra.mxu1 %vm741_vm0, %v1392_v37  ;;  %2323 = vmatmul.msk.bf16.gmra.mxu2 %vm741_vm0, %v2308_v38 }
  0x87   : > { %2358 = vmatmul.msk.bf16.gmra.mxu3 %vm741_vm0, %v2343_v39  ;;  %2384 = vmatmul.msk.bf16.gmra.mxu0 %vm741_vm0, %v1785_v47 }
  0x91   : > { %v768_v9 = vpop.f32.mrf.mxu1 }
  0x94   : > { %v763_v13 = vpop.f32.mrf.mxu0  ;;  %2289 = vmatmul.msk.bf16.gmra.mxu1 %vm741_vm0, %v1393_v8  ;;  %2324 = vmatmul.msk.bf16.gmra.mxu2 %vm741_vm0, %v2312_v10 }
  0x97   : > { %2359 = vmatmul.msk.bf16.gmra.mxu3 %vm741_vm0, %v2347_v11  ;;  %2385 = vmatmul.msk.bf16.gmra.mxu0 %vm741_vm0, %v1786_v12  ;;  %v2860_v43 = vpop.f32.mrf.mxu2 }
  0x99   : > { %v2864_v15 = vpop.f32.mrf.mxu1 }
  0x9a   : > { %v2862_v14 = vpop.f32.mrf.mxu3 }
  0x9c   : > { %v765_v16 = vpop.f32.mrf.mxu0 }
  0x9f   : > { %v2866_v17 = vpop.f32.mrf.mxu2 }
  0xa1   : > { %v836_v19 = vpop.f32.mrf.mxu1 }
  0xa2   : > { %v2868_v18 = vpop.f32.mrf.mxu3  ;;  %v837_v49 = vadd.f32 %v836_v19, %v763_v13 }
  0xa4   : > { %v1222_v20 = vpop.f32.mrf.mxu0 }
  0xa7   : > { %v1036_v21 = vpop.f32.mrf.mxu2 }
  0xa8   : > { %v1056_v51 = vadd.f32 %v1036_v21, %v837_v49 }
  0xa9   : > { %v838_v23 = vpop.f32.mrf.mxu1 }
  0xaa   : > { %v1129_v22 = vpop.f32.mrf.mxu3  ;;  %v839_v56 = vadd.f32 %v838_v23, %v765_v16 }
  0xab   : > { %v1149_v54 = vadd.f32 %v1129_v22, %v1056_v51 }
  0xac   : > { %v1224_v24 = vpop.f32.mrf.mxu0 }
  0xad   : > { %v1242_v59 = vadd.f32 %v1222_v20, %v1149_v54 }
  0xaf   : > { %v1038_v25 = vpop.f32.mrf.mxu2 }
  0xb0   : > { %v1057_v58 = vadd.f32 %v1038_v25, %v839_v56 }
  0xb1   : > { %v841_v27 = vpop.f32.mrf.mxu1 }
  0xb2   : > { %v1131_v26 = vpop.f32.mrf.mxu3  ;;  %v842_v2 = vadd.f32 %v841_v27, %v768_v9 }
  0xb3   : > { %v1150_v63 = vadd.f32 %v1131_v26, %v1057_v58 }
  0xb4   : > { %v1227_v28 = vpop.f32.mrf.mxu0 }
  0xb5   : > { %v1243_v8 = vadd.f32 %v1224_v24, %v1150_v63 }
  0xb7   : > { %v1041_v29 = vpop.f32.mrf.mxu2 }
  0xb8   : > { %v1058_v6 = vadd.f32 %v1041_v29, %v842_v2 }
  0xb9   : > { %v843_v31 = vpop.f32.mrf.mxu1 }
  0xba   : > { %v1134_v30 = vpop.f32.mrf.mxu3  ;;  %v844_v20 = vadd.f32 %v843_v31, %v2864_v15 }
  0xbb   : > { %v1151_v13 = vadd.f32 %v1134_v30, %v1058_v6 }
  0xbc   : > { %v2870_v32 = vpop.f32.mrf.mxu0 }
  0xbd   : > { %v1244_v25 = vadd.f32 %v1227_v28, %v1151_v13 }
  0xbf   : > { %v1043_v33 = vpop.f32.mrf.mxu2 }
  0xc0   : > { %v1059_v23 = vadd.f32 %v1043_v33, %v844_v20 }
  0xc1   : > { %v2872_v35 = vpop.f32.mrf.mxu1 }
  0xc2   : > { %v1136_v34 = vpop.f32.mrf.mxu3  ;;  %v847_v15 = vadd.f32 %v2872_v35, %v2860_v43 }
  0xc3   : > { %v1152_v51 = vadd.f32 %v1136_v34, %v1059_v23 }
  0xc4   : > { %v2874_v36 = vpop.f32.mrf.mxu0 }
  0xc5   : > { %v1245_v58 = vadd.f32 %v2870_v32, %v1152_v51 }
  0xc7   : > { %v2876_v37 = vpop.f32.mrf.mxu2 }
  0xc8   : > { %v1060_v34 = vadd.f32 %v2876_v37, %v847_v15 }
  0xc9   : > { %v2880_v39 = vpop.f32.mrf.mxu1 }
  0xca   : > { %v2878_v38 = vpop.f32.mrf.mxu3  ;;  %v849_v35 = vadd.f32 %v2880_v39, %v2866_v17 }
  0xcb   : > { %v1153_v63 = vadd.f32 %v2878_v38, %v1060_v34 }
  0xcc   : > { %v2882_v40 = vpop.f32.mrf.mxu0 }
  0xcd   : > { %v1246_v32 = vadd.f32 %v2874_v36, %v1153_v63 }
  0xcf   : > { %v2884_v41 = vpop.f32.mrf.mxu2 }
  0xd0   : > { %v1061_v37 = vadd.f32 %v2884_v41, %v849_v35 }
  0xd1   : > { %v2888_v44 = vpop.f32.mrf.mxu1 }
  0xd2   : > { %v2886_v42 = vpop.f32.mrf.mxu3  ;;  %v852_v41 = vadd.f32 %v2888_v44, %v2862_v14 }
  0xd4   : > { %v2890_v45 = vpop.f32.mrf.mxu0 }
  0xd7   : > { %v2892_v46 = vpop.f32.mrf.mxu2 }
  0xd9   : > { %v2896_v48 = vpop.f32.mrf.mxu1 }
  0xda   : > { %v2894_v47 = vpop.f32.mrf.mxu3  ;;  %v854_v44 = vadd.f32 %v2896_v48, %v2868_v18 }
  0xdc   : > { %v2898_v50 = vpop.f32.mrf.mxu0 }
  0xdf   : > { %v2900_v52 = vpop.f32.mrf.mxu2 }
  0xe1   : > { %v1427_v55 = vpop.f32.mrf.mxu1 }
  0xe2   : > { %v2902_v53 = vpop.f32.mrf.mxu3  ;;  %v1447_v60 = vadd.f32 %v1427_v55, %v1242_v59 }
  0xe4   : > { %v1820_v57 = vpop.f32.mrf.mxu0 }
  0xe7   : > { %v1521_v61 = vpop.f32.mrf.mxu2 }
  0xe8   : > { %v1541_v0 = vadd.f32 %v1521_v61, %v1447_v60 }
  0xe9   : > { %v1429_v1 = vpop.f32.mrf.mxu1 }
  0xea   : > { %v1615_v62 = vpop.f32.mrf.mxu3  ;;  %v1448_v10 = vadd.f32 %v1429_v1, %v1243_v8  ;;  %v1154_v8 = vadd.f32 %v2886_v42, %v1061_v37 }
  0xeb   : > { %v1635_v3 = vadd.f32 %v1615_v62, %v1541_v0 }
  0xec   : > { %v1822_v5 = vpop.f32.mrf.mxu0 }
  0xed   : > { %v1840_v7 = vadd.f32 %v1820_v57, %v1635_v3 }
  0xef   : > { %v1852_v9 = vadd.f32 %v2908_v4, %v1840_v7  ;;  %v1523_v11 = vpop.f32.mrf.mxu2 }
  0xf0   : > { %v1542_v16 = vadd.f32 %v1523_v11, %v1448_v10 }
  0xf1   : > { %1860 = vst [vmem:[%s2913_s26] sm:$0xff] %v1852_v9  ;;  %v1432_v19 = vpop.f32.mrf.mxu1  ;;  %v1868_v54 = vmax.f32 %v1852_v9, 0.0 }
  0xf2   : > { %v1617_v12 = vpop.f32.mrf.mxu3  ;;  %v1449_v27 = vadd.f32 %v1432_v19, %v1244_v25  ;;  %v1063_v25 = vadd.f32 %v2900_v52, %v854_v44 }
  0xf3   : > { %v1636_v21 = vadd.f32 %v1617_v12, %v1542_v16  ;;  %v1062_v12 = vadd.f32 %v2892_v46, %v852_v41  ;;  %v1247_v16 = vadd.f32 %v2882_v40, %v1154_v8 }
  0xf4   : > { %v1825_v22 = vpop.f32.mrf.mxu0 }
  0xf5   : > { %v1841_v24 = vadd.f32 %v1822_v5, %v1636_v21  ;;  %v1155_v23 = vadd.f32 %v2894_v47, %v1062_v12  ;;  %v1156_v47 = vadd.f32 %v2902_v53, %v1063_v25 }
  0xf7   : > { %v1853_v26 = vadd.f32 %v2908_v4, %v1841_v24  ;;  %v1526_v29 = vpop.f32.mrf.mxu2 }
  0xf8   : > { %v1543_v55 = vadd.f32 %v1526_v29, %v1449_v27 }
  0xf9   : > { %1861 = vst [vmem:[%s2913_s26 + $0x8] sm:$0xff] %v1853_v26  ;;  %v1869_v30 = vmax.f32 %v1853_v26, 0.0  ;;  %v1434_v56 = vpop.f32.mrf.mxu1  ;;  %v1248_v26 = vadd.f32 %v2890_v45, %v1155_v23  ;;  %v1249_v45 = vadd.f32 %v2898_v50, %v1156_v47 }
  0xfa   : > { %v1620_v49 = vpop.f32.mrf.mxu3  ;;  %v1450_v60 = vadd.f32 %v1434_v56, %v1245_v58 }
  0xfb   : > { %v2437_v28 = vpack.c.bf16 %v1869_v30, %v1868_v54  ;;  %v1637_v31 = vadd.f32 %v1620_v49, %v1543_v55 }
  0xfc   : > { %v1827_v33 = vpop.f32.mrf.mxu0 }
  0xfd   : > { %2438 = vst [vmem:[%s2924_s14] sm:$0xff] %v2437_v28   ;;  %v1842_v57 = vadd.f32 %v1825_v22, %v1637_v31 }
  0xff   : > { %v1854_v59 = vadd.f32 %v2908_v4, %v1842_v57  ;;  %v1528_v61 = vpop.f32.mrf.mxu2 }
 0x100   : > { %v1544_v0 = vadd.f32 %v1528_v61, %v1450_v60 }
 0x101   : > { %1862 = vst [vmem:[%s2913_s26 + $0x10] sm:$0xff] %v1854_v59  ;;  %v1437_v43 = vpop.f32.mrf.mxu1  ;;  %v1870_v9 = vmax.f32 %v1854_v59, 0.0 }
 0x102   : > { %v1622_v62 = vpop.f32.mrf.mxu3  ;;  %v1451_v6 = vadd.f32 %v1437_v43, %v1246_v32 }
 0x103   : > { %v1638_v1 = vadd.f32 %v1622_v62, %v1544_v0 }
 0x104   : > { %v1830_v3 = vpop.f32.mrf.mxu0 }
 0x105   : > { %v1843_v2 = vadd.f32 %v1827_v33, %v1638_v1 }
 0x107   : > { %v1855_v5 = vadd.f32 %v2908_v4, %v1843_v2  ;;  %v1531_v7 = vpop.f32.mrf.mxu2 }
 0x108   : > { %v1545_v17 = vadd.f32 %v1531_v7, %v1451_v6 }
 0x109   : > { %1863 = vst [vmem:[%s2913_s26 + $0x18] sm:$0xff] %v1855_v5  ;;  %v1871_v10 = vmax.f32 %v1855_v5, 0.0  ;;  %v1439_v39 = vpop.f32.mrf.mxu1 }
 0x10a   : > { %v1625_v38 = vpop.f32.mrf.mxu3  ;;  %v1452_v42 = vadd.f32 %v1439_v39, %v1247_v16 }
 0x10b   : > { %v2442_v11 = vpack.c.bf16 %v1871_v10, %v1870_v9  ;;  %v1639_v36 = vadd.f32 %v1625_v38, %v1545_v17 }
 0x10c   : > { %v1832_v20 = vpop.f32.mrf.mxu0 }
 0x10d   : > { %2454 = vst [vmem:[%s2924_s14 + $0x8] sm:$0xff] %v2442_v11   ;;  %v1844_v13 = vadd.f32 %v1830_v3, %v1639_v36 }
 0x10f   : > { %v1856_v19 = vadd.f32 %v2908_v4, %v1844_v13  ;;  %v1533_v21 = vpop.f32.mrf.mxu2 }
 0x110   : > { %v1546_v24 = vadd.f32 %v1533_v21, %v1452_v42 }
 0x111   : > { %1864 = vst [vmem:[%s2913_s26 + $0x20] sm:$0xff] %v1856_v19  ;;  %v1442_v14 = vpop.f32.mrf.mxu1  ;;  %v1872_v54 = vmax.f32 %v1856_v19, 0.0 }
 0x112   : > { %v1627_v22 = vpop.f32.mrf.mxu3  ;;  %v1453_v29 = vadd.f32 %v1442_v14, %v1248_v26 }
 0x113   : > { %v1640_v46 = vadd.f32 %v1627_v22, %v1546_v24 }
 0x114   : > { %v1835_v18 = vpop.f32.mrf.mxu0 }
 0x115   : > { %v1845_v40 = vadd.f32 %v1832_v20, %v1640_v46 }
 0x117   : > { %v1857_v27 = vadd.f32 %v2908_v4, %v1845_v40  ;;  %v1536_v49 = vpop.f32.mrf.mxu2 }
 0x118   : > { %v1547_v55 = vadd.f32 %v1536_v49, %v1453_v29 }
 0x119   : > { %1865 = vst [vmem:[%s2913_s26 + $0x28] sm:$0xff] %v1857_v27  ;;  %v1873_v30 = vmax.f32 %v1857_v27, 0.0  ;;  %v1444_v52 = vpop.f32.mrf.mxu1 }
 0x11a   : > { %v1630_v51 = vpop.f32.mrf.mxu3  ;;  %v1454_v31 = vadd.f32 %v1444_v52, %v1249_v45 }
 0x11b   : > { %v2447_v48 = vpack.c.bf16 %v1873_v30, %v1872_v54  ;;  %v1641_v56 = vadd.f32 %v1630_v51, %v1547_v55 }
 0x11c   : > { %v1837_v58 = vpop.f32.mrf.mxu0 }
 0x11d   : > { %2455 = vst [vmem:[%s2924_s14 + $0x10] sm:$0xff] %v2447_v48   ;;  %v1846_v15 = vadd.f32 %v1835_v18, %v1641_v56 }
 0x11f   : > { %v1858_v28 = vadd.f32 %v2908_v4, %v1846_v15  ;;  %v1538_v33 = vpop.f32.mrf.mxu2 }
 0x120   : > { %v1548_v53 = vadd.f32 %v1538_v33, %v1454_v31 }
 0x121   : > { %1866 = vst [vmem:[%s2913_s26 + $0x30] sm:$0xff] %v1858_v28  ;;  %v1874_v61 = vmax.f32 %v1858_v28, 0.0 }
 0x122   : > { %v1632_v34 = vpop.f32.mrf.mxu3 }
 0x123   : > { %v1642_v57 = vadd.f32 %v1632_v34, %v1548_v53 }
 0x125   : > { %v1847_v59 = vadd.f32 %v1837_v58, %v1642_v57 }
 0x127   : > { %v1859_v60 = vadd.f32 %v2908_v4, %v1847_v59 }
 0x129   : > { %1867 = vst [vmem:[%s2913_s26 + $0x38] sm:$0xff] %v1859_v60  ;;  %v1875_v62 = vmax.f32 %v1859_v60, 0.0 }
 0x12b   : > { %v2452_v63 = vpack.c.bf16 %v1875_v62, %v1874_v61 }
 0x12d   : > { %2456 = vst [vmem:[%s2924_s14 + $0x18] sm:$0xff] %v2452_v63  }
 0x12e PF: > { %s20_s11 = sadd.s32 1, %s2511_s11   ;;  %s2984_s30 = smov %s2507_s10 }
 0x12f   : > { %p17_p5 = scmp.ge.s32.totalorder %s20_s11, 4   ;;  %s2985_s10 = smov %s2987_s12 }
 0x131   :  { %19 = sbr.rel (!%p17_p5) target bundleno = 2 (0x2), region = 111 }

// kernel: last_level_p6p7_forward.3
= control target key start
LH: loop header
LB: loop body
LE: loop exit
PB: predicated region body
PF: predicated region fallthrough
CT: control target
= control target key end

     0   :  { %s2388_s27 = smov 0   ;;  %s2390_s28 = smov 0   ;;  %s2773_s0 = inlined_call_operand.vmem [shape: bf16[2,5,5,128], index: 0, kind: input, shape index: {}]   ;;  %s2774_s1 = inlined_call_operand.vmem [shape: bf16[2,5,5,128], index: 1, kind: input, shape index: {}]   ;;  %s2775_s2 = inlined_call_operand.vmem [shape: bf16[2,5,5,128], index: 2, kind: input, shape index: {}]   ;;  %s2776_s3 = inlined_call_operand.vmem [shape: bf16[2,5,5,128], index: 3, kind: input, shape index: {}]   ;;  %s2777_s4 = inlined_call_operand.vmem [shape: bf16[2,1,5,128], index: 4, kind: input, shape index: {}]   ;;  %s2778_s5 = inlined_call_operand.vmem [shape: bf16[2,1,5,128], index: 5, kind: input, shape index: {}]   ;;  %s2779_s6 = inlined_call_operand.vmem [shape: bf16[1152,128], index: 6, kind: input, shape index: {}]   ;;  %s2780_s7 = inlined_call_operand.vmem [shape: f32[1,128], index: 7, kind: input, shape index: {}]   ;;  %s2781_s8 = inlined_call_operand.vmem [shape: f32[2,4,4,128], index: 8, kind: output, shape index: {}]  }
   0x1   :  { %s2392_s29 = smov 0  }
   0x2 LB: > { %s30_s30 = sadd.s32 1, %s2337_s28  ;;  %p1912_p0 = scmp.ge.s32.totalorder %s2341_s29, 1  ;;  %s2341_s29 = sphi %s2392_s29, %s18_s29   ;;  %s2337_s28 = sphi %s2390_s28, %s2789_s28   ;;  %s2333_s27 = sphi %s2388_s27, %s2788_s27  }
   0x3   : > { %p32_p1 = scmp.ge.s32.totalorder %s30_s30, 2  ;;  %p394_p2 = scmp.lt.s32.totalorder %s2341_s29, 3 }
   0x5   : > { %s2791_s30 = smov (%p32_p1, %s30_s30), 0  ;;  %p395_p3 = pnand %p1912_p0, %p394_p2 }
   0x6   : > { %p498_p4 = scmp.lt.s32.totalorder (!%p395_p3), %s2333_s27, 1 }
   0x7   : > { %398 = sbr.rel (%p395_p3) target bundleno = 259 (0x103), region = 52 }
   0xc   : > { %v2236_v0 = vld [vmem:[%s2779_s6 + $0x78] sm:$0xff]  ;;  %v2235_v3 = vld [vmem:[%s2779_s6 + $0x70] sm:$0xff]  ;;  %s2793_s27 = smov (!%p498_p4, %s2333_s27), 1  ;;  %v2234_v8 = vld [vmem:[%s2779_s6 + $0x68] sm:$0xff]  ;;  %vm791_vm0 = vcmask 1041408   ;;  %vm795_vm2 = vcmask 1043458  }
   0xd   : > { %v2244_v1 = vld [vmem:[%s2779_s6 + $0xb8] sm:$0xff]  ;;  %690 = vmatpush.bf16.msra.mxu0 %v2236_v0  ;;  %v2243_v4 = vld [vmem:[%s2779_s6 + $0xb0] sm:$0xff]  ;;  %v2242_v9 = vld [vmem:[%s2779_s6 + $0xa8] sm:$0xff]  ;;  %s2445_s15 = smul.u32 20, %s2793_s27  ;;  %vm817_vm1 = vsmask.f32 1280 }
   0xe   : > { %v2228_v2 = vld [vmem:[%s2779_s6 + $0x38] sm:$0xff]  ;;  %953 = vmatpush.bf16.msra.mxu2 %v2244_v1  ;;  %v2227_v6 = vld [vmem:[%s2779_s6 + $0x30] sm:$0xff]  ;;  %v2226_v10 = vld [vmem:[%s2779_s6 + $0x28] sm:$0xff]  ;;  %vm818_vm3 = vsmask.f32 3336  ;;  %s1917_s13 = sshll.u32 %s2793_s27, 2 }
   0xf   : > { %v2252_v5 = vld [vmem:[%s2779_s6 + $0xf8] sm:$0xff]  ;;  %765 = vmatpush.bf16.msra.mxu1 %v2228_v2  ;;  %v2251_v7 = vld [vmem:[%s2779_s6 + $0xf0] sm:$0xff]  ;;  %v2250_v11 = vld [vmem:[%s2779_s6 + $0xe8] sm:$0xff]  ;;  %s2463_s26 = scalar_lea.vmem %s2774_s1, %s2445_s15  ;;  %s2485_s20 = scalar_lea.vmem %s2773_s0, %s2445_s15  ;;  %vm820_vm4 = vsmask.f32 5392 }
  0x10   : > { %1050 = vmatpush.bf16.msra.mxu3 %v2252_v5  ;;  %v2233_v12 = vld [vmem:[%s2779_s6 + $0x60] sm:$0xff]  ;;  %v2232_v16 = vld [vmem:[%s2779_s6 + $0x58] sm:$0xff]  ;;  %v611_v22 = vld [vmem:[%s2463_s26 + $0x8] sm:$0x3]  ;;  %vm822_vm5 = vsmask.f32 7448  ;;  %s541_s16 = scalar_lea.vmem %s2775_s2, %s2445_s15  ;;  %s2660_s12 = scalar_lea.vmem %s2776_s3, %s2445_s15 }
  0x11   : > { %691 = vmatpush.bf16.msra.mxu0 %v2235_v3  ;;  %v2241_v13 = vld [vmem:[%s2779_s6 + $0xa0] sm:$0xff]  ;;  %v2240_v17 = vld [vmem:[%s2779_s6 + $0x98] sm:$0xff]  ;;  %v612_v23 = vld [vmem:[%s2463_s26 + $0xc] sm:$0x3]  ;;  %636 = vst [vmem:[#allocation1 + $0x2] ss:$4 sm:$0xff] %v611_v22  ;;  %s2710_s19 = scalar_lea.vmem %s2777_s4, %s1917_s13 }
  0x12   : > { %954 = vmatpush.bf16.msra.mxu2 %v2243_v4  ;;  %v2225_v14 = vld [vmem:[%s2779_s6 + $0x20] sm:$0xff]  ;;  %v2224_v18 = vld [vmem:[%s2779_s6 + $0x18] sm:$0xff]  ;;  %v2231_v24 = vld [vmem:[%s2779_s6 + $0x50] sm:$0xff]  ;;  %639 = vst [vmem:[#allocation1 + $0x3] ss:$4 sm:$0xff] %v612_v23 }
  0x13   : > { %766 = vmatpush.bf16.msra.mxu1 %v2227_v6  ;;  %v2249_v15 = vld [vmem:[%s2779_s6 + $0xe0] sm:$0xff]  ;;  %v2248_v19 = vld [vmem:[%s2779_s6 + $0xd8] sm:$0xff]  ;;  %v2239_v25 = vld [vmem:[%s2779_s6 + $0x90] sm:$0xff] }
  0x14   : > { %1051 = vmatpush.bf16.msra.mxu3 %v2251_v7  ;;  %v609_v20 = vld [vmem:[%s2463_s26] sm:$0x3]  ;;  %v610_v21 = vld [vmem:[%s2463_s26 + $0x4] sm:$0x3]  ;;  %v2223_v26 = vld [vmem:[%s2779_s6 + $0x10] sm:$0xff] }
  0x15   : > { %692 = vmatpush.bf16.msra.mxu0 %v2234_v8  ;;  %630 = vst [vmem:[#allocation1] ss:$4 sm:$0xff] %v609_v20  ;;  %v2247_v27 = vld [vmem:[%s2779_s6 + $0xd0] sm:$0xff]  ;;  %v779_v28 = vld [vmem:[%s2485_s20] sm:$0x7]  ;;  %v2230_v35 = vld [vmem:[%s2779_s6 + $0x48] sm:$0xff] }
  0x16   : > { %955 = vmatpush.bf16.msra.mxu2 %v2242_v9  ;;  %633 = vst [vmem:[#allocation1 + $0x1] ss:$4 sm:$0xff] %v610_v21  ;;  %v780_v29 = vld [vmem:[%s2485_s20 + $0x4] sm:$0x7]  ;;  %v781_v30 = vld [vmem:[%s2485_s20 + $0x8] sm:$0x7]  ;;  %vm2547_vm6 = vmor %vm817_vm1, %vm818_vm3 }
  0x17   : > { %767 = vmatpush.bf16.msra.mxu1 %v2226_v10  ;;  %v782_v31 = vld [vmem:[%s2485_s20 + $0xc] sm:$0x7]  ;;  %v787_v32 = vrot.slane %v779_v28, 2  ;;  %v788_v33 = vrot.slane %v780_v29, 2  ;;  %v789_v34 = vrot.slane %v781_v30, 2  ;;  %v2229_v46 = vld [vmem:[%s2779_s6 + $0x40] sm:$0xff]  ;;  %vm2557_vm7 = vmor %vm2547_vm6, %vm820_vm4 }
  0x18   : > { %1052 = vmatpush.bf16.msra.mxu3 %v2250_v11  ;;  %v2238_v36 = vld [vmem:[%s2779_s6 + $0x88] sm:$0xff]  ;;  %v790_v37 = vrot.slane %v782_v31, 2  ;;  %v589_v41 = vld [vmem:[%s2485_s20] sm:$0x3]  ;;  %v590_v49 = vld [vmem:[%s2485_s20 + $0x4] sm:$0x3] }
  0x19   : > { %693 = vmatpush.bf16.msra.mxu0 %v2233_v12  ;;  %v794_v38 = vsel %vm791_vm0, %v779_v28, %v787_v32  ;;  %v796_v39 = vsel %vm795_vm2, %v779_v28, %v787_v32  ;;  %v2222_v40 = vld [vmem:[%s2779_s6 + $0x8] sm:$0xff]  ;;  %v801_v43 = vsel %vm791_vm0, %v780_v29, %v788_v33  ;;  %v802_v44 = vsel %vm795_vm2, %v780_v29, %v788_v33  ;;  %v2237_v47 = vld [vmem:[%s2779_s6 + $0x80] sm:$0xff]  ;;  %v2260_v54 = vld [vmem:[%s2779_s6 + $0x138] sm:$0xff] }
  0x1a   : > { %956 = vmatpush.bf16.msra.mxu2 %v2241_v13  ;;  %v798_v42 = vrot.slane %v796_v39, 2  ;;  %v808_v45 = vsel %vm795_vm2, %v781_v30, %v789_v34  ;;  %v2246_v48 = vld [vmem:[%s2779_s6 + $0xc8] sm:$0xff]  ;;  %v804_v51 = vrot.slane %v802_v44, 2  ;;  %v807_v52 = vsel %vm791_vm0, %v781_v30, %v789_v34  ;;  %v2221_v55 = vld [vmem:[%s2779_s6] sm:$0xff]  ;;  %v2276_v60 = vld [vmem:[%s2779_s6 + $0x1b8] sm:$0xff] }
  0x1b   : > { %768 = vmatpush.bf16.msra.mxu1 %v2225_v14  ;;  %v591_v50 = vld [vmem:[%s2485_s20 + $0x8] sm:$0x3]  ;;  %v814_v53 = vsel %vm795_vm2, %v782_v31, %v790_v37  ;;  %v592_v56 = vld [vmem:[%s2485_s20 + $0xc] sm:$0x3]  ;;  %v810_v57 = vrot.slane %v808_v45, 2  ;;  %v824_v58 = vshrl.u32 %v794_v38, 16  ;;  %v813_v63 = vsel %vm791_vm0, %v782_v31, %v790_v37  ;;  %vm2576_vm8 = vmor %vm2557_vm7, %vm822_vm5 }
  0x1c   : > { %1053 = vmatpush.bf16.msra.mxu3 %v2249_v15  ;;  %v827_v59 = vshll.u32 %v794_v38, 16  ;;  %v2268_v61 = vld [vmem:[%s2779_s6 + $0x178] sm:$0xff]  ;;  %v816_v0 = vrot.slane %v814_v53, 2  ;;  %v837_v2 = vshrl.u32 %v801_v43, 16  ;;  %v840_v3 = vshll.u32 %v801_v43, 16  ;;  %v2245_v12 = vld [vmem:[%s2779_s6 + $0xc0] sm:$0xff] }
  0x1d   : > { %694 = vmatpush.bf16.msra.mxu0 %v2232_v16  ;;  %v640_v62 = vld.sshfl [vmem:[#allocation1] sm:$0xff pattern:$0x73625140]  ;;  %v826_v4 = vrot.slane %v824_v58, 6  ;;  %v833_v6 = vshll.u32 %v798_v42, 16  ;;  %v850_v7 = vshrl.u32 %v807_v52, 16 }
  0x1e   : > { %957 = vmatpush.bf16.msra.mxu2 %v2240_v17  ;;  %705 = vst [vmem:[#allocation1] ss:$4 sm:$0xff] %v589_v41  ;;  %v829_v5 = vrot.slane %v827_v59, 7  ;;  %v839_v8 = vrot.slane %v837_v2, 6  ;;  %v842_v9 = vrot.slane %v840_v3, 7  ;;  %v846_v10 = vshll.u32 %v804_v51, 16 }
  0x1f   : > { %769 = vmatpush.bf16.msra.mxu1 %v2224_v18  ;;  %708 = vst [vmem:[#allocation1 + $0x1] ss:$4 sm:$0xff] %v590_v49  ;;  %v853_v11 = vshll.u32 %v807_v52, 16  ;;  %v852_v15 = vrot.slane %v850_v7, 6  ;;  %v859_v16 = vshll.u32 %v810_v57, 16  ;;  %v863_v17 = vshrl.u32 %v813_v63, 16 }
  0x20   : > { %1054 = vmatpush.bf16.msra.mxu3 %v2248_v19  ;;  %711 = vst [vmem:[#allocation1 + $0x2] ss:$4 sm:$0xff] %v591_v50  ;;  %v830_v14 = vor.u32 %v829_v5, %v826_v4  ;;  %v2284_v18 = vld [vmem:[%s2779_s6 + $0x1f8] sm:$0xff]  ;;  %v843_v19 = vor.u32 %v842_v9, %v839_v8  ;;  %v866_v21 = vshll.u32 %v813_v63, 16  ;;  %v872_v22 = vshll.u32 %v816_v0, 16  ;;  %v2259_v23 = vld [vmem:[%s2779_s6 + $0x130] sm:$0xff] }
  0x21   : > { %695 = vmatpush.bf16.msra.mxu0 %v2231_v24  ;;  %714 = vst [vmem:[#allocation1 + $0x3] ss:$4 sm:$0xff] %v592_v56  ;;  %v855_v20 = vrot.slane %v853_v11, 7  ;;  %v2267_v28 = vld [vmem:[%s2779_s6 + $0x170] sm:$0xff]  ;;  %v848_v31 = vrot.slane %v846_v10, 7  ;;  %v861_v34 = vrot.slane %v859_v16, 7 }
  0x22   : > { %958 = vmatpush.bf16.msra.mxu2 %v2239_v25  ;;  %v831_v24 = vrot.slane %v830_v14, 2  ;;  %v835_v25 = vrot.slane %v833_v6, 7  ;;  %v844_v30 = vrot.slane %v843_v19, 2  ;;  %v868_v33 = vrot.slane %v866_v21, 7  ;;  %v2258_v39 = vld [vmem:[%s2779_s6 + $0x128] sm:$0xff]  ;;  %v2257_v49 = vld [vmem:[%s2779_s6 + $0x120] sm:$0xff] }
  0x23   : > { %770 = vmatpush.bf16.msra.mxu1 %v2223_v26  ;;  %v865_v26 = vrot.slane %v863_v17, 6  ;;  %v856_v32 = vor.u32 %v855_v20, %v852_v15  ;;  %v874_v38 = vrot.slane %v872_v22, 7  ;;  %v2274_v41 = vld [vmem:[%s2779_s6 + $0x1a8] sm:$0xff]  ;;  %v2273_v50 = vld [vmem:[%s2779_s6 + $0x1a0] sm:$0xff]  ;;  %v2272_v56 = vld [vmem:[%s2779_s6 + $0x198] sm:$0xff] }
  0x24   : > { %1055 = vmatpush.bf16.msra.mxu3 %v2247_v27  ;;  %v2275_v27 = vld [vmem:[%s2779_s6 + $0x1b0] sm:$0xff]  ;;  %v2266_v42 = vld [vmem:[%s2779_s6 + $0x168] sm:$0xff]  ;;  %v849_v43 = vsel %vm2576_vm8, %v844_v30, %v848_v31  ;;  %v2265_v51 = vld [vmem:[%s2779_s6 + $0x160] sm:$0xff] }
  0x25   : > { %696 = vmatpush.bf16.msra.mxu0 %v2230_v35  ;;  %v2283_v35 = vld [vmem:[%s2779_s6 + $0x1f0] sm:$0xff]  ;;  %v869_v37 = vor.u32 %v868_v33, %v865_v26  ;;  %v2281_v52 = vld [vmem:[%s2779_s6 + $0x1e0] sm:$0xff]  ;;  %v2264_v57 = vld [vmem:[%s2779_s6 + $0x158] sm:$0xff] }
  0x26   : > { %959 = vmatpush.bf16.msra.mxu2 %v2238_v36  ;;  %v857_v36 = vrot.slane %v856_v32, 2  ;;  %v1163_v53 = vld [vmem:[%s541_s16] sm:$0x7]  ;;  %v1165_v58 = vld [vmem:[%s541_s16 + $0x8] sm:$0x7]  ;;  %v2255_v2 = vld [vmem:[%s2779_s6 + $0x110] sm:$0xff] }
  0x27   : > { %771 = vmatpush.bf16.msra.mxu1 %v2222_v40  ;;  %v836_v40 = vsel %vm2576_vm8, %v831_v24, %v835_v25  ;;  %v870_v44 = vrot.slane %v869_v37, 2  ;;  %v1166_v59 = vld [vmem:[%s541_s16 + $0xc] sm:$0x7]  ;;  %v970_v0 = vld [vmem:[%s541_s16 + $0x4] sm:$0x3]  ;;  %v1173_v3 = vrot.slane %v1165_v58, 2 }
  0x28   : > { %1056 = vmatpush.bf16.msra.mxu3 %v2246_v48  ;;  %v715_v45 = vld.sshfl [vmem:[#allocation1] sm:$0xff pattern:$0x73625140]  ;;  %v2282_v48 = vld [vmem:[%s2779_s6 + $0x1e8] sm:$0xff]  ;;  %v2271_v5 = vld [vmem:[%s2779_s6 + $0x190] sm:$0xff]  ;;  %v1174_v7 = vrot.slane %v1166_v59, 2 }
  0x29   : > { %697 = vmatpush.bf16.msra.mxu0 %v2229_v46  ;;  %v862_v46 = vsel %vm2576_vm8, %v857_v36, %v861_v34  ;;  %893 = vst [vmem:[#allocation1] ss:$4 sm:$0xff] %v836_v40  ;;  %v971_v1 = vld [vmem:[%s541_s16 + $0x8] sm:$0x3]  ;;  %v2263_v6 = vld [vmem:[%s2779_s6 + $0x150] sm:$0xff]  ;;  %v1189_v13 = vsel %vm791_vm0, %v1165_v58, %v1173_v3  ;;  %v2253_v25 = vld [vmem:[%s2779_s6 + $0x100] sm:$0xff] }
  0x2a   : > { %960 = vmatpush.bf16.msra.mxu2 %v2237_v47  ;;  %v875_v47 = vsel %vm2576_vm8, %v870_v44, %v874_v38  ;;  %896 = vst [vmem:[#allocation1 + $0x1] ss:$4 sm:$0xff] %v849_v43  ;;  %v972_v8 = vld [vmem:[%s541_s16 + $0xc] sm:$0x3]  ;;  %v2279_v10 = vld [vmem:[%s2779_s6 + $0x1d0] sm:$0xff]  ;;  %v1195_v16 = vsel %vm791_vm0, %v1166_v59, %v1174_v7  ;;  %v1228_v24 = vshll.u32 %v1189_v13, 16  ;;  %v1196_v34 = vsel %vm795_vm2, %v1166_v59, %v1174_v7 }
  0x2b   : > { %772 = vmatpush.bf16.msra.mxu1 %v2221_v55  ;;  %899 = vst [vmem:[#allocation1 + $0x2] ss:$4 sm:$0xff] %v862_v46  ;;  %v1164_v55 = vld [vmem:[%s541_s16 + $0x4] sm:$0x7]  ;;  %v2270_v14 = vld [vmem:[%s2779_s6 + $0x188] sm:$0xff]  ;;  %v1241_v30 = vshll.u32 %v1195_v16, 16 }
  0x2c   : > { %1057 = vmatpush.bf16.msra.mxu3 %v2245_v12  ;;  %698 = vmatmul.bf16.vlgmr.msra.gmra.mxu0 %v640_v62  ;;  %902 = vst [vmem:[#allocation1 + $0x3] ss:$4 sm:$0xff] %v875_v47  ;;  %v2280_v62 = vld [vmem:[%s2779_s6 + $0x1d8] sm:$0xff]  ;;  %v1172_v63 = vrot.slane %v1164_v55, 2  ;;  %v2254_v12 = vld [vmem:[%s2779_s6 + $0x108] sm:$0xff]  ;;  %v2269_v26 = vld [vmem:[%s2779_s6 + $0x180] sm:$0xff] }
  0x2d   : > { %1147 = vmatpush.bf16.msrb.mxu0 %v2260_v54  ;;  %v2256_v54 = vld [vmem:[%s2779_s6 + $0x118] sm:$0xff]  ;;  %v2262_v15 = vld [vmem:[%s2779_s6 + $0x148] sm:$0xff]  ;;  %v1066_v32 = vld [vmem:[%s2660_s12] sm:$0x3]  ;;  %v1198_v47 = vrot.slane %v1196_v34, 2 }
  0x2e   : > { %1426 = vmatpush.bf16.msrb.mxu2 %v2276_v60  ;;  %773 = vmatmul.bf16.vlgmr.msra.gmra.mxu1 %v715_v45  ;;  %v1171_v60 = vrot.slane %v1163_v53, 2  ;;  %v1183_v11 = vsel %vm791_vm0, %v1164_v55, %v1172_v63  ;;  %v1184_v22 = vsel %vm795_vm2, %v1164_v55, %v1172_v63  ;;  %v2292_v31 = vld [vmem:[%s2779_s6 + $0x238] sm:$0xff]  ;;  %v2261_v37 = vld [vmem:[%s2779_s6 + $0x140] sm:$0xff]  ;;  %v1230_v45 = vrot.slane %v1228_v24, 7 }
  0x2f   : > { %1328 = vmatpush.bf16.msrb.mxu1 %v2268_v61  ;;  %v969_v61 = vld [vmem:[%s541_s16] sm:$0x3]  ;;  %v1212_v20 = vshrl.u32 %v1183_v11, 16  ;;  %v1215_v21 = vshll.u32 %v1183_v11, 16  ;;  %v1067_v38 = vld [vmem:[%s2660_s12 + $0x4] sm:$0x3] }
  0x30   : > { %1524 = vmatpush.bf16.msrb.mxu3 %v2284_v18  ;;  %v1177_v9 = vsel %vm791_vm0, %v1163_v53, %v1171_v60  ;;  %v1178_v19 = vsel %vm795_vm2, %v1163_v53, %v1171_v60  ;;  %v2278_v53 = vld [vmem:[%s2779_s6 + $0x1c8] sm:$0xff]  ;;  %v2277_v59 = vld [vmem:[%s2779_s6 + $0x1c0] sm:$0xff] }
  0x31   : > { %1148 = vmatpush.bf16.msrb.mxu0 %v2259_v23  ;;  %v1199_v17 = vshrl.u32 %v1177_v9, 16  ;;  %v1202_v18 = vshll.u32 %v1177_v9, 16  ;;  %v1225_v23 = vshrl.u32 %v1189_v13, 16  ;;  %v1180_v33 = vrot.slane %v1178_v19, 2  ;;  %v2183_v11 = vld [vmem:[%s2485_s20 + $0x4] sm:$0x7] }
  0x32   : > { %1427 = vmatpush.bf16.msrb.mxu2 %v2275_v27  ;;  %v1190_v27 = vsel %vm795_vm2, %v1165_v58, %v1173_v3  ;;  %v1214_v40 = vrot.slane %v1212_v20, 6 }
  0x33   : > { %1329 = vmatpush.bf16.msrb.mxu1 %v2267_v28  ;;  %v903_v4 = vld.sshfl [vmem:[#allocation1] sm:$0xff pattern:$0x73625140]  ;;  %v1238_v28 = vshrl.u32 %v1195_v16, 16  ;;  %v1204_v36 = vrot.slane %v1202_v18, 7  ;;  %v1192_v43 = vrot.slane %v1190_v27, 2 }
  0x34   : > { %1525 = vmatpush.bf16.msrb.mxu3 %v2283_v35  ;;  %961 = vmatmul.bf16.vlgmr.msra.gmra.mxu2 %v903_v4  ;;  %990 = vst [vmem:[#allocation1] ss:$4 sm:$0xff] %v969_v61  ;;  %v1201_v35 = vrot.slane %v1199_v17, 6  ;;  %v1227_v44 = vrot.slane %v1225_v23, 6  ;;  %v1247_v61 = vshll.u32 %v1198_v47, 16  ;;  %v1548_v17 = vrot.slane %v2183_v11, 2 }
  0x35   : > { %1149 = vmatpush.bf16.msrb.mxu0 %v2258_v39  ;;  %993 = vst [vmem:[#allocation1 + $0x1] ss:$4 sm:$0xff] %v970_v0  ;;  %v1186_v39 = vrot.slane %v1184_v22, 2  ;;  %v1234_v58 = vshll.u32 %v1192_v43, 16  ;;  %v1543_v16 = vld [vmem:[%s2710_s19] sm:$0x7] }
  0x36   : > { %1428 = vmatpush.bf16.msrb.mxu2 %v2274_v41  ;;  %996 = vst [vmem:[#allocation1 + $0x2] ss:$4 sm:$0xff] %v971_v1  ;;  %v1217_v41 = vrot.slane %v1215_v21, 7  ;;  %v1551_v20 = vrot.slane %v1543_v16, 2  ;;  %v1554_v21 = vsel %vm791_vm0, %v2183_v11, %v1548_v17  ;;  %v1555_v22 = vsel %vm795_vm2, %v2183_v11, %v1548_v17 }
  0x37   : > { %1330 = vmatpush.bf16.msrb.mxu1 %v2266_v42  ;;  %999 = vst [vmem:[#allocation1 + $0x3] ss:$4 sm:$0xff] %v972_v8  ;;  %v1068_v42 = vld [vmem:[%s2660_s12 + $0x8] sm:$0x3]  ;;  %v1221_v55 = vshll.u32 %v1186_v39, 16  ;;  %v1236_v4 = vrot.slane %v1234_v58, 7 }
  0x38   : > { %1526 = vmatpush.bf16.msrb.mxu3 %v2282_v48  ;;  %v1240_v48 = vrot.slane %v1238_v28, 6  ;;  %v1576_v34 = vshrl.u32 %v1554_v21, 16 }
  0x39   : > { %1150 = vmatpush.bf16.msrb.mxu0 %v2257_v49  ;;  %v1243_v49 = vrot.slane %v1241_v30, 7  ;;  %v1223_v1 = vrot.slane %v1221_v55, 7  ;;  %v2286_v55 = vld [vmem:[%s2779_s6 + $0x208] sm:$0xff] }
  0x3a   : > { %1429 = vmatpush.bf16.msrb.mxu2 %v2273_v50  ;;  %v1069_v50 = vld [vmem:[%s2660_s12 + $0xc] sm:$0x3]  ;;  %s578_s12 = scalar_lea.vmem %s2778_s5, %s1917_s13 }
  0x3b   : > { %1331 = vmatpush.bf16.msrb.mxu1 %v2265_v51  ;;  %v1205_v51 = vor.u32 %v1204_v36, %v1201_v35  ;;  %v1244_v60 = vor.u32 %v1243_v49, %v1240_v48  ;;  %v2113_v35 = vld [vmem:[%s2485_s20 + $0x4] sm:$0x3] }
  0x3c   : > { %1527 = vmatpush.bf16.msrb.mxu3 %v2281_v52  ;;  %v1208_v52 = vshll.u32 %v1180_v33, 16  ;;  %v1573_v33 = vsel %vm795_vm2, %v1543_v16, %v1551_v20 }
  0x3d   : > { %1151 = vmatpush.bf16.msrb.mxu0 %v2256_v54  ;;  %v1218_v54 = vor.u32 %v1217_v41, %v1214_v40  ;;  %v1575_v36 = vrot.slane %v1573_v33, 2  ;;  %v2287_v40 = vld [vmem:[%s2779_s6 + $0x210] sm:$0xff]  ;;  %v2114_v41 = vld [vmem:[%s2485_s20 + $0x8] sm:$0x3] }
  0x3e   : > { %1430 = vmatpush.bf16.msrb.mxu2 %v2272_v56  ;;  %v1000_v46 = vld.sshfl [vmem:[#allocation1] sm:$0xff pattern:$0x73625140]  ;;  %v2291_v56 = vld [vmem:[%s2779_s6 + $0x230] sm:$0xff]  ;;  %v1210_v63 = vrot.slane %v1208_v52, 7 }
  0x3f   : > { %1332 = vmatpush.bf16.msrb.mxu1 %v2264_v57  ;;  %1058 = vmatmul.bf16.vlgmr.msra.gmra.mxu3 %v1000_v46  ;;  %1087 = vst [vmem:[#allocation1] ss:$4 sm:$0xff] %v1066_v32  ;;  %v1231_v57 = vor.u32 %v1230_v45, %v1227_v44  ;;  %v1219_v0 = vrot.slane %v1218_v54, 2  ;;  %v1572_v32 = vsel %vm791_vm0, %v1543_v16, %v1551_v20  ;;  %v2115_v46 = vld [vmem:[%s2485_s20 + $0xc] sm:$0x3] }
  0x40   : > { %1528 = vmatpush.bf16.msrb.mxu3 %v2280_v62  ;;  %1090 = vst [vmem:[#allocation1 + $0x1] ss:$4 sm:$0xff] %v1067_v38  ;;  %v1206_v62 = vrot.slane %v1205_v51, 2  ;;  %v2149_v16 = vld [vmem:[%s2463_s26 + $0x8] sm:$0x3] }
  0x41   : > { %1152 = vmatpush.bf16.msrb.mxu0 %v2255_v2  ;;  %1093 = vst [vmem:[#allocation1 + $0x2] ss:$4 sm:$0xff] %v1068_v42  ;;  %v2290_v2 = vld [vmem:[%s2779_s6 + $0x228] sm:$0xff]  ;;  %v1232_v3 = vrot.slane %v1231_v57, 2  ;;  %v1224_v8 = vsel %vm2576_vm8, %v1219_v0, %v1223_v1  ;;  %v1578_v42 = vrot.slane %v1576_v34, 6  ;;  %v1624_v0 = vshll.u32 %v1575_v36, 16 }
  0x42   : > { %1431 = vmatpush.bf16.msrb.mxu2 %v2271_v5  ;;  %1096 = vst [vmem:[#allocation1 + $0x3] ss:$4 sm:$0xff] %v1069_v50  ;;  %v1245_v5 = vrot.slane %v1244_v60, 2  ;;  %v1211_v7 = vsel %vm2576_vm8, %v1206_v62, %v1210_v63  ;;  %v1348_v50 = vld [vmem:[%s2710_s19] sm:$0x3]  ;;  %v1618_v60 = vshll.u32 %v1572_v32, 16 }
  0x43   : > { %1333 = vmatpush.bf16.msrb.mxu1 %v2263_v6  ;;  %v1249_v6 = vrot.slane %v1247_v61, 7 }
  0x44   : > { %1529 = vmatpush.bf16.msrb.mxu3 %v2279_v10  ;;  %v1237_v10 = vsel %vm2576_vm8, %v1232_v3, %v1236_v4  ;;  %v1620_v4 = vrot.slane %v1618_v60, 7 }
  0x45   : > { %1153 = vmatpush.bf16.msrb.mxu0 %v2254_v12  ;;  %v2289_v12 = vld [vmem:[%s2779_s6 + $0x220] sm:$0xff]  ;;  %v1250_v13 = vsel %vm2576_vm8, %v1245_v5, %v1249_v6 }
  0x46   : > { %1432 = vmatpush.bf16.msrb.mxu2 %v2270_v14  ;;  %v2184_v14 = vld [vmem:[%s2485_s20 + $0x8] sm:$0x7] }
  0x47   : > { %1334 = vmatpush.bf16.msrb.mxu1 %v2262_v15  ;;  %v2185_v15 = vld [vmem:[%s2485_s20 + $0xc] sm:$0x7]  ;;  %v1549_v18 = vrot.slane %v2184_v14, 2 }
  0x48   : > { %1530 = vmatpush.bf16.msrb.mxu3 %v2278_v53  ;;  %v1550_v19 = vrot.slane %v2185_v15, 2 }
  0x49   : > { %1154 = vmatpush.bf16.msrb.mxu0 %v2253_v25  ;;  %v1097_v9 = vld.sshfl [vmem:[#allocation1] sm:$0xff pattern:$0x73625140]  ;;  %v1560_v23 = vsel %vm791_vm0, %v2184_v14, %v1549_v18  ;;  %v1561_v24 = vsel %vm795_vm2, %v2184_v14, %v1549_v18  ;;  %v2288_v25 = vld [vmem:[%s2779_s6 + $0x218] sm:$0xff]  ;;  %v2150_v18 = vld [vmem:[%s2463_s26 + $0xc] sm:$0x3] }
  0x4a   : > { %1433 = vmatpush.bf16.msrb.mxu2 %v2269_v26  ;;  %1268 = vst [vmem:[#allocation1] ss:$4 sm:$0xff] %v1211_v7  ;;  %v1557_v26 = vrot.slane %v1555_v22, 2  ;;  %v1563_v27 = vrot.slane %v1561_v24, 2  ;;  %v1566_v28 = vsel %vm791_vm0, %v2185_v15, %v1550_v19  ;;  %v1567_v30 = vsel %vm795_vm2, %v2185_v15, %v1550_v19  ;;  %v2148_v15 = vld [vmem:[%s2463_s26 + $0x4] sm:$0x3] }
  0x4b   : > { %1335 = vmatpush.bf16.msrb.mxu1 %v2261_v37  ;;  %1271 = vst [vmem:[#allocation1 + $0x1] ss:$4 sm:$0xff] %v1224_v8  ;;  %v1579_v37 = vshll.u32 %v1554_v21, 16  ;;  %v1589_v39 = vshrl.u32 %v1560_v23, 16  ;;  %v1592_v43 = vshll.u32 %v1560_v23, 16  ;;  %v1602_v45 = vshrl.u32 %v1566_v28, 16 }
  0x4c   : > { %1531 = vmatpush.bf16.msrb.mxu3 %v2277_v59  ;;  %1155 = vmatmul.bf16.vlgmr.msrb.gmra.mxu0 %v1097_v9  ;;  %1274 = vst [vmem:[#allocation1 + $0x2] ss:$4 sm:$0xff] %v1237_v10  ;;  %v1585_v38 = vshll.u32 %v1557_v26, 16  ;;  %v1598_v44 = vshll.u32 %v1563_v27, 16  ;;  %v1605_v49 = vshll.u32 %v1566_v28, 16  ;;  %v1615_v59 = vshrl.u32 %v1572_v32, 16 }
  0x4d   : > { %1705 = vmatpush.bf16.msra.mxu0 %v2292_v31  ;;  %1277 = vst [vmem:[#allocation1 + $0x3] ss:$4 sm:$0xff] %v1250_v13  ;;  %v1569_v31 = vrot.slane %v1567_v30, 2  ;;  %v1581_v47 = vrot.slane %v1579_v37, 7  ;;  %v1591_v48 = vrot.slane %v1589_v39, 6  ;;  %v1594_v52 = vrot.slane %v1592_v43, 7 }
  0x4e   : > { %v1587_v51 = vrot.slane %v1585_v38, 7  ;;  %v1604_v53 = vrot.slane %v1602_v45, 6  ;;  %v1607_v58 = vrot.slane %v1605_v49, 7  ;;  %v1600_v62 = vrot.slane %v1598_v44, 7  ;;  %v2285_v10 = vld [vmem:[%s2779_s6 + $0x200] sm:$0xff]  ;;  %s2220_s26 = sshll.u32 %s2793_s27, 4 }
  0x4f   : > { %v1611_v54 = vshll.u32 %v1569_v31, 16  ;;  %v1582_v57 = vor.u32 %v1581_v47, %v1578_v42  ;;  %v1595_v61 = vor.u32 %v1594_v52, %v1591_v48  ;;  %v1617_v3 = vrot.slane %v1615_v59, 6  ;;  %v1446_v19 = vld [vmem:[%s578_s12] sm:$0x3]  ;;  %s587_s15 = scalar_lea.vmem %s2781_s8, %s2220_s26 }
  0x50   : > { %v1626_v9 = vrot.slane %v1624_v0, 7 }
  0x51   : > { %1706 = vmatpush.bf16.msra.mxu0 %v2291_v56  ;;  %v1613_v63 = vrot.slane %v1611_v54, 7  ;;  %v1583_v1 = vrot.slane %v1582_v57, 2  ;;  %v1596_v5 = vrot.slane %v1595_v61, 2  ;;  %v1621_v8 = vor.u32 %v1620_v4, %v1617_v3 }
  0x53   : > { %v1588_v6 = vsel %vm2576_vm8, %v1583_v1, %v1587_v51  ;;  %v1601_v11 = vsel %vm2576_vm8, %v1596_v5, %v1600_v62  ;;  %v1622_v13 = vrot.slane %v1621_v8, 2 }
  0x54   : > { %v1278_v56 = vld.sshfl [vmem:[#allocation1] sm:$0xff pattern:$0x73625140] }
  0x55   : > { %1707 = vmatpush.bf16.msra.mxu0 %v2290_v2  ;;  %1366 = vst [vmem:[#allocation1] ss:$4 sm:$0xff] %v2113_v35  ;;  %1336 = vmatmul.bf16.vlgmr.msrb.gmra.mxu1 %v1278_v56  ;;  %v1608_v2 = vor.u32 %v1607_v58, %v1604_v53  ;;  %v1627_v14 = vsel %vm2576_vm8, %v1622_v13, %v1626_v9 }
  0x56   : > { %1369 = vst [vmem:[#allocation1 + $0x1] ss:$4 sm:$0xff] %v2114_v41 }
  0x57   : > { %1372 = vst [vmem:[#allocation1 + $0x2] ss:$4 sm:$0xff] %v2115_v46  ;;  %v1609_v7 = vrot.slane %v1608_v2, 2  ;;  %v2318_v46 = vld [vmem:[%s2780_s7] ss:$0 sm:$0xff] }
  0x58   : > { %1375 = vst [vmem:[#allocation1 + $0x3] ss:$4 sm:$0xff] %v1348_v50 }
  0x59   : > { %1708 = vmatpush.bf16.msra.mxu0 %v2289_v12  ;;  %v1614_v12 = vsel %vm2576_vm8, %v1609_v7, %v1613_v63 }
  0x5d   : > { %1709 = vmatpush.bf16.msra.mxu0 %v2288_v25 }
  0x5f   : > { %v1376_v17 = vld.sshfl [vmem:[#allocation1] sm:$0xff pattern:$0x73625140] }
  0x60   : > { %1434 = vmatmul.bf16.vlgmr.msrb.gmra.mxu2 %v1376_v17  ;;  %1464 = vst [vmem:[#allocation1] ss:$4 sm:$0xff] %v2148_v15 }
  0x61   : > { %1710 = vmatpush.bf16.msra.mxu0 %v2287_v40  ;;  %1467 = vst [vmem:[#allocation1 + $0x1] ss:$4 sm:$0xff] %v2149_v16 }
  0x62   : > { %1470 = vst [vmem:[#allocation1 + $0x2] ss:$4 sm:$0xff] %v2150_v18 }
  0x63   : > { %1473 = vst [vmem:[#allocation1 + $0x3] ss:$4 sm:$0xff] %v1446_v19 }
  0x65   : > { %1711 = vmatpush.bf16.msra.mxu0 %v2286_v55 }
  0x69   : > { %1712 = vmatpush.bf16.msra.mxu0 %v2285_v10 }
  0x6a   : > { %v1474_v20 = vld.sshfl [vmem:[#allocation1] sm:$0xff pattern:$0x73625140] }
  0x6b   : > { %1532 = vmatmul.bf16.vlgmr.msrb.gmra.mxu3 %v1474_v20  ;;  %1645 = vst [vmem:[#allocation1] ss:$4 sm:$0xff] %v1588_v6 }
  0x6c   : > { %1648 = vst [vmem:[#allocation1 + $0x1] ss:$4 sm:$0xff] %v1601_v11 }
  0x6d   : > { %1651 = vst [vmem:[#allocation1 + $0x2] ss:$4 sm:$0xff] %v1614_v12 }
  0x6e   : > { %1654 = vst [vmem:[#allocation1 + $0x3] ss:$4 sm:$0xff] %v1627_v14 }
  0x75   : > { %v1655_v29 = vld.sshfl [vmem:[#allocation1] sm:$0xff pattern:$0x73625140] }
  0x76   : > { %1713 = vmatmul.bf16.vlgmr.msra.gmra.mxu0 %v1655_v29 }
  0xa9   : > { %v699_v21 = vpop.f32.mrf.mxu0 }
  0xab   : > { %v774_v22 = vpop.f32.mrf.mxu1 }
  0xac   : > { %v775_v25 = vadd.f32 %v774_v22, %v699_v21 }
  0xb1   : > { %v701_v24 = vpop.f32.mrf.mxu0 }
  0xb3   : > { %v776_v27 = vpop.f32.mrf.mxu1 }
  0xb4   : > { %v777_v34 = vadd.f32 %v776_v27, %v701_v24 }
  0xb7   : > { %v962_v23 = vpop.f32.mrf.mxu2 }
  0xb8   : > { %v967_v28 = vadd.f32 %v962_v23, %v775_v25 }
  0xbf   : > { %v964_v30 = vpop.f32.mrf.mxu2 }
  0xc0   : > { %v968_v39 = vadd.f32 %v964_v30, %v777_v34 }
  0xc2   : > { %v1059_v26 = vpop.f32.mrf.mxu3 }
  0xc3   : > { %v1064_v32 = vadd.f32 %v1059_v26, %v967_v28 }
  0xc9   : > { %v1156_v31 = vpop.f32.mrf.mxu0 }
  0xca   : > { %v1061_v33 = vpop.f32.mrf.mxu3  ;;  %v1161_v35 = vadd.f32 %v1156_v31, %v1064_v32 }
  0xcb   : > { %v1065_v42 = vadd.f32 %v1061_v33, %v968_v39 }
  0xd1   : > { %v1158_v38 = vpop.f32.mrf.mxu0 }
  0xd2   : > { %v1337_v36 = vpop.f32.mrf.mxu1  ;;  %v1162_v44 = vadd.f32 %v1158_v38, %v1065_v42 }
  0xd3   : > { %v1342_v40 = vadd.f32 %v1337_v36, %v1161_v35 }
  0xda   : > { %v1339_v47 = vpop.f32.mrf.mxu1 }
  0xdb   : > { %v1343_v51 = vadd.f32 %v1339_v47, %v1162_v44 }
  0xe3   : > { %v1435_v37 = vpop.f32.mrf.mxu2 }
  0xe4   : > { %v1440_v43 = vadd.f32 %v1435_v37, %v1342_v40 }
  0xeb   : > { %v1437_v50 = vpop.f32.mrf.mxu2 }
  0xec   : > { %v1441_v54 = vadd.f32 %v1437_v50, %v1343_v51 }
  0xee   : > { %v1533_v41 = vpop.f32.mrf.mxu3 }
  0xef   : > { %v1538_v45 = vadd.f32 %v1533_v41, %v1440_v43 }
  0xf3   : > { %v1714_v48 = vpop.f32.mrf.mxu0 }
  0xf4   : > { %v1719_v49 = vadd.f32 %v1714_v48, %v1538_v45 }
  0xf6   : > { %v1725_v52 = vadd.f32 %v2318_v46, %v1719_v49  ;;  %v1535_v53 = vpop.f32.mrf.mxu3 }
  0xf7   : > { %v1539_v56 = vadd.f32 %v1535_v53, %v1441_v54 }
  0xf8   : > { %v1729_v55 = vrot.slane %v1725_v52, 4  ;;  %1733 = vst [vmem:[%s587_s15] sm:$0xf] %v1725_v52 }
  0xfa   : > { %1734 = vst [vmem:[%s587_s15 + $0x4] sm:$0xf] %v1729_v55 }
  0xfb   : > { %v1716_v57 = vpop.f32.mrf.mxu0 }
  0xfc   : > { %v1720_v58 = vadd.f32 %v1716_v57, %v1539_v56 }
  0xfe   : > { %v1726_v59 = vadd.f32 %v2318_v46, %v1720_v58 }
 0x100   : > { %v1730_v60 = vrot.slane %v1726_v59, 4  ;;  %1735 = vst [vmem:[%s587_s15 + $0x8] sm:$0xf] %v1726_v59 }
 0x102   : > { %1736 = vst [vmem:[%s587_s15 + $0xc] sm:$0xf] %v1730_v60 }
 0x103 PF: > { %s18_s29 = sadd.s32 1, %s2341_s29   ;;  %s2788_s27 = smov %s2337_s28 }
 0x104   : > { %p15_p5 = scmp.ge.s32.totalorder %s18_s29, 4   ;;  %s2789_s28 = smov %s2791_s30 }
 0x106   :  { %17 = sbr.rel (!%p15_p5) target bundleno = 2 (0x2), region = 126 }

</bundles_post_ra>
